<compile_context>
chip_gen: v6e
topology: v6e:2x2x1
jax: 0.10.0
libtpu: 0.0.40
codegen_flags: <defaults>
</compile_context>

<pallas_src>
import functools

import jax
import jax.numpy as jnp
from jax import lax
from jax.experimental import pallas as pl
from jax.experimental.pallas import tpu as pltpu

PAD = 3                      # max padding / dilation over the three branches
DILATIONS = (1, 2, 3)
LANE = 128
SUBLANE = 8


def _round_up(x, m):
    return ((x + m - 1) // m) * m


def dsc_kernel(W, slack, x_ref, w_ref, col_ref, o_ref, xs_ref, patch_ref):
    """One batch element per grid step.

    x_ref     : (1, Cin, H*W)  NCHW input with spatial flattened (lane-dense)
    w_ref     : (Cout, KP)     fused dw*pw weight; column 27*Cin = fused bias
    col_ref   : (1, H*W)       int32 output-column index (q -> q mod W)
    o_ref     : (1, Cout, H*W) lane-dense output block
    xs_ref    : (Cin, slack + H*W + slack) zero-slacked flat image scratch
    patch_ref : (KP, H*W)      im2col patch matrix (+ all-ones bias row)
    """
    Cin = x_ref.shape[1]
    HW = x_ref.shape[2]
    KP = w_ref.shape[1]
    ktaps = 27 * Cin

    # ---- flat zero-slacked image -----------------------------------------
    # Border(-slack)-only zeroing: the interior is fully rewritten each grid
    # step by the aligned contiguous copy below.  Deliberately NOT a
    # pl.when(program_id == 0) one-shot init: under
    # dimension_semantics=("parallel",) the second TensorCore's private
    # scratch never executes step 0.
    xs_ref[:, :slack] = jnp.zeros((Cin, slack), xs_ref.dtype)
    xs_ref[:, slack + HW:] = jnp.zeros((Cin, slack), xs_ref.dtype)
    xs_ref[:, slack:slack + HW] = x_ref[0]

    # ---- im2col: 27 contiguous lane slices, no reshapes / relayouts -------
    # Output pixel q = i*W + j.  Tap (dy, dx) reads flat index q + dy*W + dx,
    # i.e. a contiguous slice at a constant static offset.  Vertical
    # out-of-range reads land in the zero slack; horizontal wraparound is
    # zeroed with a per-dx column mask (6 masks, hoisted out of the tap loop).
    col = jnp.broadcast_to(col_ref[...], (Cin, HW))
    col_masks = {}
    for dx in sorted({s * d for d in DILATIONS for s in (-1, 1)}):
        col_masks[dx] = (col + dx >= 0) & (col + dx < W)

    for di, d in enumerate(DILATIONS):
        for ky in range(3):
            dy = (ky - 1) * d
            for kx in range(3):
                dx = (kx - 1) * d
                tap = di * 9 + ky * 3 + kx
                start = slack + dy * W + dx
                v = xs_ref[:, start:start + HW]
                if dx != 0:
                    v = jnp.where(col_masks[dx], v, 0.0)
                patch_ref[tap * Cin:(tap + 1) * Cin, :] = v

    # Bias row (ones) + zero rows padding the contraction dim up to KP=128.
    patch_ref[ktaps:, :] = jnp.zeros((KP - ktaps, HW), patch_ref.dtype)
    patch_ref[ktaps:ktaps + 1, :] = jnp.ones((1, HW), patch_ref.dtype)

    # ---- single MXU matmul: (Cout, KP) @ (KP, H*W) -> (Cout, H*W) ---------
    acc = jnp.dot(w_ref[...], patch_ref[...],
                  preferred_element_type=jnp.float32)
    o_ref[0] = acc.astype(o_ref.dtype)           # unmasked lane-dense store


def depthwise_separable_conv(x_nchw, dw_w, dw_b, pw_w, pw_b):
    """x_nchw: (B, Cin, H, W); dw_w: (3, Cin, 1, 3, 3); dw_b: (3, Cin);
    pw_w: (Cout, Cin, 1, 1); pw_b: (Cout,).  Returns (B, Cout, H, W)."""
    B, Cin, H, W = x_nchw.shape
    Cout = pw_w.shape[0]
    HW = H * W
    dtype = x_nchw.dtype

    # Free metadata reshape (contiguous) — no NCHW->NHWC transpose pass.
    x = x_nchw.reshape(B, Cin, HW)

    # Fuse the three dilated depthwise convs into the pointwise weight
    # (exact; computed in f32, cast once at the end — note: for bf16 inputs
    # the fused product is rounded once instead of twice vs. the reference):
    #   weff[co, tap*Cin + ci] = dw[tap, ci] * pw[co, ci]
    # The fused bias (sum(dw_b) @ pw^T + pw_b) rides in an extra weight column
    # matched by an all-ones patch row.
    ktaps = 27 * Cin
    KP = _round_up(ktaps + 1, LANE)
    dww = jnp.transpose(dw_w[:, :, 0, :, :], (0, 2, 3, 1)).reshape(27, Cin)
    dww = dww.astype(jnp.float32)                              # [tap, ci]
    pw2d = pw_w[:, :, 0, 0].astype(jnp.float32)                # (Cout, Cin)
    wtap = dww[:, :, None] * jnp.transpose(pw2d)[None, :, :]   # (27, Cin, Cout)
    weff = jnp.transpose(wtap.reshape(ktaps, Cout))            # (Cout, ktaps)
    bias = (jnp.sum(dw_b.astype(jnp.float32), axis=0) @ jnp.transpose(pw2d)
            + pw_b.astype(jnp.float32))                        # (Cout,)
    w_full = jnp.zeros((Cout, KP), jnp.float32)
    w_full = w_full.at[:, :ktaps].set(weff).at[:, ktaps].set(bias)
    w_full = w_full.astype(dtype)

    # Output-column index (q -> q mod W), built host/XLA-side once.
    col_ids = jnp.tile(jnp.arange(W, dtype=jnp.int32), H)[None, :]  # (1, HW)

    # Zero-slack width: covers the largest |dy*W + dx| and keeps the interior
    # fill lane-aligned.
    slack = _round_up(PAD * W + PAD, LANE)
    SL = HW + 2 * slack

    # Layout-aware VMEM budget (last dim -> 128 lanes, 2nd-last -> 8 sublanes),
    # generation-aware cap.
    eb = jnp.dtype(dtype).itemsize
    blk_in = _round_up(Cin, SUBLANE) * _round_up(HW, LANE) * eb
    blk_w = _round_up(Cout, SUBLANE) * KP * eb
    blk_col = SUBLANE * _round_up(HW, LANE) * 4
    blk_out = _round_up(Cout, SUBLANE) * _round_up(HW, LANE) * eb
    scr = (_round_up(Cin, SUBLANE) * _round_up(SL, LANE)
           + KP * _round_up(HW, LANE)) * eb
    need = 2 * (blk_in + blk_w + blk_col + blk_out) + scr
    try:
        vmem_cap = pltpu.get_tpu_info().vmem_capacity_bytes
    except Exception:                                  # pragma: no cover
        vmem_cap = 64 << 20                            # conservative (v7x)
    vmem_limit = int(min(max(4 * need, 32 << 20), (vmem_cap * 3) // 4))

    kernel = functools.partial(dsc_kernel, W, slack)

    out = pl.pallas_call(
        kernel,
        out_shape=jax.ShapeDtypeStruct((B, Cout, HW), dtype),
        grid_spec=pltpu.PrefetchScalarGridSpec(
            num_scalar_prefetch=0,
            grid=(B,),
            in_specs=[
                pl.BlockSpec((1, Cin, HW), lambda b: (b, 0, 0)),
                pl.BlockSpec((Cout, KP), lambda b: (0, 0)),
                pl.BlockSpec((1, HW), lambda b: (0, 0)),
            ],
            out_specs=pl.BlockSpec((1, Cout, HW), lambda b: (b, 0, 0)),
            scratch_shapes=[
                pltpu.VMEM((Cin, SL), dtype),
                pltpu.VMEM((KP, HW), dtype),
            ],
        ),
        compiler_params=pltpu.CompilerParams(
            dimension_semantics=("parallel",),     # shard batch over v7x TCs
            vmem_limit_bytes=vmem_limit,
        ),
    )(x, w_full, col_ids)

    # Free metadata reshape back to NCHW.
    return out.reshape(B, Cout, H, W)


def reference_forward(x, dw_w, dw_b, pw_w, pw_b):
    """Pure-JAX reference mirroring the PyTorch module (NCHW)."""
    Cin = x.shape[1]
    out = jnp.zeros_like(x)
    for di, d in enumerate(DILATIONS):
        o = lax.conv_general_dilated(
            x, dw_w[di], window_strides=(1, 1),
            padding=((d, d), (d, d)), rhs_dilation=(d, d),
            dimension_numbers=("NCHW", "OIHW", "NCHW"),
            feature_group_count=Cin,
            precision=lax.Precision.HIGHEST)
        out = out + o + dw_b[di].reshape(1, -1, 1, 1)
    out = lax.conv_general_dilated(
        out, pw_w, window_strides=(1, 1), padding="VALID",
        dimension_numbers=("NCHW", "OIHW", "NCHW"),
        precision=lax.Precision.HIGHEST)
    return out + pw_b.reshape(1, -1, 1, 1)


if __name__ == "__main__":
    B, Cin, Cout, H, W = 2, 4, 8, 16, 16

    key = jax.random.PRNGKey(0)
    k_x, k_dw, k_db, k_pw, k_pb = jax.random.split(key, 5)

    x = jax.random.normal(k_x, (B, Cin, H, W), jnp.float32)
    # Depthwise weights/biases for the three dilation branches (PyTorch shape
    # (Cin, 1, 3, 3) each), stacked along a leading axis of size 3.
    dw_w = 0.1 * jax.random.normal(k_dw, (3, Cin, 1, 3, 3), jnp.float32)
    dw_b = 0.1 * jax.random.normal(k_db, (3, Cin), jnp.float32)
    # Pointwise 1x1 conv weight/bias (PyTorch shape (Cout, Cin, 1, 1)).
    pw_w = 0.1 * jax.random.normal(k_pw, (Cout, Cin, 1, 1), jnp.float32)
    pw_b = 0.1 * jax.random.normal(k_pb, (Cout,), jnp.float32)

    out = depthwise_separable_conv(x, dw_w, dw_b, pw_w, pw_b)
    out = jax.block_until_ready(out)

    ref = reference_forward(x, dw_w, dw_b, pw_w, pw_b)
    assert out.shape == (B, Cout, H, W)
    # Tolerance covers default-precision MXU f32 (bf16-pass) rounding; any
    # structural bug (wrong tap/mask/weight row) is orders of magnitude larger.
    assert jnp.allclose(out, ref, atol=2e-3, rtol=2e-3), (
        "mismatch vs reference: max abs err = %g"
        % float(jnp.max(jnp.abs(out - ref))))

    print("KERNEL_OK")
</pallas_src>

<mosaic_0001>
module attributes {stable_mosaic.version = 11 : i64} {
  func.func @dsc_kernel(%arg0: i32, %arg1: memref<1x4x256xf32, #tpu.memory_space<vmem>>, %arg2: memref<8x128xf32, #tpu.memory_space<vmem>>, %arg3: memref<1x256xi32, #tpu.memory_space<vmem>>, %arg4: memref<1x8x256xf32, #tpu.memory_space<vmem>>, %arg5: memref<4x512xf32, #tpu.memory_space<vmem>>, %arg6: memref<128x256xf32, #tpu.memory_space<vmem>>) attributes {dimension_semantics = [#tpu.dimension_semantics<parallel>], iteration_bounds = array<i64: 2>, scalar_prefetch = 0 : i64, scratch_operands = 2 : i64, tpu.core_type = #tpu.core_type<tc>, window_params = [{transform_indices = @transform_0, window_bounds = array<i64: 1, 4, 256>}, {pipeline_mode = #tpu.pipeline_mode<synchronous>, transform_indices = @transform_1, window_bounds = array<i64: 8, 128>}, {pipeline_mode = #tpu.pipeline_mode<synchronous>, transform_indices = @transform_2, window_bounds = array<i64: 1, 256>}, {transform_indices = @transform_3, window_bounds = array<i64: 1, 8, 256>}]} {
    %cst = arith.constant 0.000000e+00 : f32
    %0 = vector.broadcast %cst : f32 to vector<4x128xf32>
    %c0 = arith.constant 0 : index
    %c0_0 = arith.constant 0 : index
    %1 = vector.load %arg5[%c0, %c0_0] : memref<4x512xf32, #tpu.memory_space<vmem>>, vector<4x128xf32>
    tpu.vector_store %arg5[%c0, %c0_0], %0 {strides = array<i32>} : memref<4x512xf32, #tpu.memory_space<vmem>>, vector<4x128xf32>,
    %cst_1 = arith.constant 0.000000e+00 : f32
    %2 = vector.broadcast %cst_1 : f32 to vector<4x128xf32>
    %c0_2 = arith.constant 0 : index
    %c384 = arith.constant 384 : index
    %3 = vector.load %arg5[%c0_2, %c384] : memref<4x512xf32, #tpu.memory_space<vmem>>, vector<4x128xf32>
    tpu.vector_store %arg5[%c0_2, %c384], %2 {strides = array<i32>} : memref<4x512xf32, #tpu.memory_space<vmem>>, vector<4x128xf32>,
    %c0_3 = arith.constant 0 : index
    %c0_4 = arith.constant 0 : index
    %c0_5 = arith.constant 0 : index
    %4 = vector.load %arg1[%c0_3, %c0_4, %c0_5] : memref<1x4x256xf32, #tpu.memory_space<vmem>>, vector<1x4x256xf32>
    %5 = vector.shape_cast %4 : vector<1x4x256xf32> to vector<4x256xf32>
    %c0_6 = arith.constant 0 : index
    %c128 = arith.constant 128 : index
    %6 = vector.load %arg5[%c0_6, %c128] : memref<4x512xf32, #tpu.memory_space<vmem>>, vector<4x256xf32>
    tpu.vector_store %arg5[%c0_6, %c128], %5 {strides = array<i32>} : memref<4x512xf32, #tpu.memory_space<vmem>>, vector<4x256xf32>,
    %c0_7 = arith.constant 0 : index
    %c0_8 = arith.constant 0 : index
    %7 = vector.load %arg3[%c0_7, %c0_8] : memref<1x256xi32, #tpu.memory_space<vmem>>, vector<1x256xi32>
    %8 = vector.shape_cast %7 : vector<1x256xi32> to vector<1x256xi32>
    %9 = vector.broadcast %8 : vector<1x256xi32> to vector<4x256xi32>
    %c-3_i32 = arith.constant -3 : i32
    %10 = vector.broadcast %c-3_i32 : i32 to vector<4x256xi32>
    %11 = arith.addi %9, %10 : vector<4x256xi32>
    %c0_i32 = arith.constant 0 : i32
    %12 = vector.broadcast %c0_i32 : i32 to vector<4x256xi32>
    %13 = arith.cmpi sge, %11, %12 : vector<4x256xi32>
    %c-3_i32_9 = arith.constant -3 : i32
    %14 = vector.broadcast %c-3_i32_9 : i32 to vector<4x256xi32>
    %15 = arith.addi %9, %14 : vector<4x256xi32>
    %c16_i32 = arith.constant 16 : i32
    %16 = vector.broadcast %c16_i32 : i32 to vector<4x256xi32>
    %17 = arith.cmpi slt, %15, %16 : vector<4x256xi32>
    %18 = arith.andi %13, %17 : vector<4x256xi1>
    %c-2_i32 = arith.constant -2 : i32
    %19 = vector.broadcast %c-2_i32 : i32 to vector<4x256xi32>
    %20 = arith.addi %9, %19 : vector<4x256xi32>
    %c0_i32_10 = arith.constant 0 : i32
    %21 = vector.broadcast %c0_i32_10 : i32 to vector<4x256xi32>
    %22 = arith.cmpi sge, %20, %21 : vector<4x256xi32>
    %c-2_i32_11 = arith.constant -2 : i32
    %23 = vector.broadcast %c-2_i32_11 : i32 to vector<4x256xi32>
    %24 = arith.addi %9, %23 : vector<4x256xi32>
    %c16_i32_12 = arith.constant 16 : i32
    %25 = vector.broadcast %c16_i32_12 : i32 to vector<4x256xi32>
    %26 = arith.cmpi slt, %24, %25 : vector<4x256xi32>
    %27 = arith.andi %22, %26 : vector<4x256xi1>
    %c-1_i32 = arith.constant -1 : i32
    %28 = vector.broadcast %c-1_i32 : i32 to vector<4x256xi32>
    %29 = arith.addi %9, %28 : vector<4x256xi32>
    %c0_i32_13 = arith.constant 0 : i32
    %30 = vector.broadcast %c0_i32_13 : i32 to vector<4x256xi32>
    %31 = arith.cmpi sge, %29, %30 : vector<4x256xi32>
    %c-1_i32_14 = arith.constant -1 : i32
    %32 = vector.broadcast %c-1_i32_14 : i32 to vector<4x256xi32>
    %33 = arith.addi %9, %32 : vector<4x256xi32>
    %c16_i32_15 = arith.constant 16 : i32
    %34 = vector.broadcast %c16_i32_15 : i32 to vector<4x256xi32>
    %35 = arith.cmpi slt, %33, %34 : vector<4x256xi32>
    %36 = arith.andi %31, %35 : vector<4x256xi1>
    %c1_i32 = arith.constant 1 : i32
    %37 = vector.broadcast %c1_i32 : i32 to vector<4x256xi32>
    %38 = arith.addi %9, %37 : vector<4x256xi32>
    %c0_i32_16 = arith.constant 0 : i32
    %39 = vector.broadcast %c0_i32_16 : i32 to vector<4x256xi32>
    %40 = arith.cmpi sge, %38, %39 : vector<4x256xi32>
    %c1_i32_17 = arith.constant 1 : i32
    %41 = vector.broadcast %c1_i32_17 : i32 to vector<4x256xi32>
    %42 = arith.addi %9, %41 : vector<4x256xi32>
    %c16_i32_18 = arith.constant 16 : i32
    %43 = vector.broadcast %c16_i32_18 : i32 to vector<4x256xi32>
    %44 = arith.cmpi slt, %42, %43 : vector<4x256xi32>
    %45 = arith.andi %40, %44 : vector<4x256xi1>
    %c2_i32 = arith.constant 2 : i32
    %46 = vector.broadcast %c2_i32 : i32 to vector<4x256xi32>
    %47 = arith.addi %9, %46 : vector<4x256xi32>
    %c0_i32_19 = arith.constant 0 : i32
    %48 = vector.broadcast %c0_i32_19 : i32 to vector<4x256xi32>
    %49 = arith.cmpi sge, %47, %48 : vector<4x256xi32>
    %c2_i32_20 = arith.constant 2 : i32
    %50 = vector.broadcast %c2_i32_20 : i32 to vector<4x256xi32>
    %51 = arith.addi %9, %50 : vector<4x256xi32>
    %c16_i32_21 = arith.constant 16 : i32
    %52 = vector.broadcast %c16_i32_21 : i32 to vector<4x256xi32>
    %53 = arith.cmpi slt, %51, %52 : vector<4x256xi32>
    %54 = arith.andi %49, %53 : vector<4x256xi1>
    %c3_i32 = arith.constant 3 : i32
    %55 = vector.broadcast %c3_i32 : i32 to vector<4x256xi32>
    %56 = arith.addi %9, %55 : vector<4x256xi32>
    %c0_i32_22 = arith.constant 0 : i32
    %57 = vector.broadcast %c0_i32_22 : i32 to vector<4x256xi32>
    %58 = arith.cmpi sge, %56, %57 : vector<4x256xi32>
    %c3_i32_23 = arith.constant 3 : i32
    %59 = vector.broadcast %c3_i32_23 : i32 to vector<4x256xi32>
    %60 = arith.addi %9, %59 : vector<4x256xi32>
    %c16_i32_24 = arith.constant 16 : i32
    %61 = vector.broadcast %c16_i32_24 : i32 to vector<4x256xi32>
    %62 = arith.cmpi slt, %60, %61 : vector<4x256xi32>
    %63 = arith.andi %58, %62 : vector<4x256xi1>
    %c0_25 = arith.constant 0 : index
    %c111 = arith.constant 111 : index
    %64 = vector.load %arg5[%c0_25, %c111] : memref<4x512xf32, #tpu.memory_space<vmem>>, vector<4x256xf32>
    %cst_26 = arith.constant 0.000000e+00 : f32
    %65 = vector.broadcast %cst_26 : f32 to vector<4x256xf32>
    %66 = arith.select %36, %64, %65 : vector<4x256xi1>, vector<4x256xf32>
    %c0_27 = arith.constant 0 : index
    %c0_28 = arith.constant 0 : index
    %67 = vector.load %arg6[%c0_27, %c0_28] : memref<128x256xf32, #tpu.memory_space<vmem>>, vector<4x256xf32>
    tpu.vector_store %arg6[%c0_27, %c0_28], %66 {strides = array<i32>} : memref<128x256xf32, #tpu.memory_space<vmem>>, vector<4x256xf32>,
    %c0_29 = arith.constant 0 : index
    %c112 = arith.constant 112 : index
    %68 = vector.load %arg5[%c0_29, %c112] : memref<4x512xf32, #tpu.memory_space<vmem>>, vector<4x256xf32>
    %c4 = arith.constant 4 : index
    %c0_30 = arith.constant 0 : index
    %69 = vector.load %arg6[%c4, %c0_30] : memref<128x256xf32, #tpu.memory_space<vmem>>, vector<4x256xf32>
    tpu.vector_store %arg6[%c4, %c0_30], %68 {strides = array<i32>} : memref<128x256xf32, #tpu.memory_space<vmem>>, vector<4x256xf32>,
    %c0_31 = arith.constant 0 : index
    %c113 = arith.constant 113 : index
    %70 = vector.load %arg5[%c0_31, %c113] : memref<4x512xf32, #tpu.memory_space<vmem>>, vector<4x256xf32>
    %cst_32 = arith.constant 0.000000e+00 : f32
    %71 = vector.broadcast %cst_32 : f32 to vector<4x256xf32>
    %72 = arith.select %45, %70, %71 : vector<4x256xi1>, vector<4x256xf32>
    %c8 = arith.constant 8 : index
    %c0_33 = arith.constant 0 : index
    %73 = vector.load %arg6[%c8, %c0_33] : memref<128x256xf32, #tpu.memory_space<vmem>>, vector<4x256xf32>
    tpu.vector_store %arg6[%c8, %c0_33], %72 {strides = array<i32>} : memref<128x256xf32, #tpu.memory_space<vmem>>, vector<4x256xf32>,
    %c0_34 = arith.constant 0 : index
    %c127 = arith.constant 127 : index
    %74 = vector.load %arg5[%c0_34, %c127] : memref<4x512xf32, #tpu.memory_space<vmem>>, vector<4x256xf32>
    %cst_35 = arith.constant 0.000000e+00 : f32
    %75 = vector.broadcast %cst_35 : f32 to vector<4x256xf32>
    %76 = arith.select %36, %74, %75 : vector<4x256xi1>, vector<4x256xf32>
    %c12 = arith.constant 12 : index
    %c0_36 = arith.constant 0 : index
    %77 = vector.load %arg6[%c12, %c0_36] : memref<128x256xf32, #tpu.memory_space<vmem>>, vector<4x256xf32>
    tpu.vector_store %arg6[%c12, %c0_36], %76 {strides = array<i32>} : memref<128x256xf32, #tpu.memory_space<vmem>>, vector<4x256xf32>,
    %c0_37 = arith.constant 0 : index
    %c128_38 = arith.constant 128 : index
    %78 = vector.load %arg5[%c0_37, %c128_38] : memref<4x512xf32, #tpu.memory_space<vmem>>, vector<4x256xf32>
    %c16 = arith.constant 16 : index
    %c0_39 = arith.constant 0 : index
    %79 = vector.load %arg6[%c16, %c0_39] : memref<128x256xf32, #tpu.memory_space<vmem>>, vector<4x256xf32>
    tpu.vector_store %arg6[%c16, %c0_39], %78 {strides = array<i32>} : memref<128x256xf32, #tpu.memory_space<vmem>>, vector<4x256xf32>,
    %c0_40 = arith.constant 0 : index
    %c129 = arith.constant 129 : index
    %80 = vector.load %arg5[%c0_40, %c129] : memref<4x512xf32, #tpu.memory_space<vmem>>, vector<4x256xf32>
    %cst_41 = arith.constant 0.000000e+00 : f32
    %81 = vector.broadcast %cst_41 : f32 to vector<4x256xf32>
    %82 = arith.select %45, %80, %81 : vector<4x256xi1>, vector<4x256xf32>
    %c20 = arith.constant 20 : index
    %c0_42 = arith.constant 0 : index
    %83 = vector.load %arg6[%c20, %c0_42] : memref<128x256xf32, #tpu.memory_space<vmem>>, vector<4x256xf32>
    tpu.vector_store %arg6[%c20, %c0_42], %82 {strides = array<i32>} : memref<128x256xf32, #tpu.memory_space<vmem>>, vector<4x256xf32>,
    %c0_43 = arith.constant 0 : index
    %c143 = arith.constant 143 : index
    %84 = vector.load %arg5[%c0_43, %c143] : memref<4x512xf32, #tpu.memory_space<vmem>>, vector<4x256xf32>
    %cst_44 = arith.constant 0.000000e+00 : f32
    %85 = vector.broadcast %cst_44 : f32 to vector<4x256xf32>
    %86 = arith.select %36, %84, %85 : vector<4x256xi1>, vector<4x256xf32>
    %c24 = arith.constant 24 : index
    %c0_45 = arith.constant 0 : index
    %87 = vector.load %arg6[%c24, %c0_45] : memref<128x256xf32, #tpu.memory_space<vmem>>, vector<4x256xf32>
    tpu.vector_store %arg6[%c24, %c0_45], %86 {strides = array<i32>} : memref<128x256xf32, #tpu.memory_space<vmem>>, vector<4x256xf32>,
    %c0_46 = arith.constant 0 : index
    %c144 = arith.constant 144 : index
    %88 = vector.load %arg5[%c0_46, %c144] : memref<4x512xf32, #tpu.memory_space<vmem>>, vector<4x256xf32>
    %c28 = arith.constant 28 : index
    %c0_47 = arith.constant 0 : index
    %89 = vector.load %arg6[%c28, %c0_47] : memref<128x256xf32, #tpu.memory_space<vmem>>, vector<4x256xf32>
    tpu.vector_store %arg6[%c28, %c0_47], %88 {strides = array<i32>} : memref<128x256xf32, #tpu.memory_space<vmem>>, vector<4x256xf32>,
    %c0_48 = arith.constant 0 : index
    %c145 = arith.constant 145 : index
    %90 = vector.load %arg5[%c0_48, %c145] : memref<4x512xf32, #tpu.memory_space<vmem>>, vector<4x256xf32>
    %cst_49 = arith.constant 0.000000e+00 : f32
    %91 = vector.broadcast %cst_49 : f32 to vector<4x256xf32>
    %92 = arith.select %45, %90, %91 : vector<4x256xi1>, vector<4x256xf32>
    %c32 = arith.constant 32 : index
    %c0_50 = arith.constant 0 : index
    %93 = vector.load %arg6[%c32, %c0_50] : memref<128x256xf32, #tpu.memory_space<vmem>>, vector<4x256xf32>
    tpu.vector_store %arg6[%c32, %c0_50], %92 {strides = array<i32>} : memref<128x256xf32, #tpu.memory_space<vmem>>, vector<4x256xf32>,
    %c0_51 = arith.constant 0 : index
    %c94 = arith.constant 94 : index
    %94 = vector.load %arg5[%c0_51, %c94] : memref<4x512xf32, #tpu.memory_space<vmem>>, vector<4x256xf32>
    %cst_52 = arith.constant 0.000000e+00 : f32
    %95 = vector.broadcast %cst_52 : f32 to vector<4x256xf32>
    %96 = arith.select %27, %94, %95 : vector<4x256xi1>, vector<4x256xf32>
    %c36 = arith.constant 36 : index
    %c0_53 = arith.constant 0 : index
    %97 = vector.load %arg6[%c36, %c0_53] : memref<128x256xf32, #tpu.memory_space<vmem>>, vector<4x256xf32>
    tpu.vector_store %arg6[%c36, %c0_53], %96 {strides = array<i32>} : memref<128x256xf32, #tpu.memory_space<vmem>>, vector<4x256xf32>,
    %c0_54 = arith.constant 0 : index
    %c96 = arith.constant 96 : index
    %98 = vector.load %arg5[%c0_54, %c96] : memref<4x512xf32, #tpu.memory_space<vmem>>, vector<4x256xf32>
    %c40 = arith.constant 40 : index
    %c0_55 = arith.constant 0 : index
    %99 = vector.load %arg6[%c40, %c0_55] : memref<128x256xf32, #tpu.memory_space<vmem>>, vector<4x256xf32>
    tpu.vector_store %arg6[%c40, %c0_55], %98 {strides = array<i32>} : memref<128x256xf32, #tpu.memory_space<vmem>>, vector<4x256xf32>,
    %c0_56 = arith.constant 0 : index
    %c98 = arith.constant 98 : index
    %100 = vector.load %arg5[%c0_56, %c98] : memref<4x512xf32, #tpu.memory_space<vmem>>, vector<4x256xf32>
    %cst_57 = arith.constant 0.000000e+00 : f32
    %101 = vector.broadcast %cst_57 : f32 to vector<4x256xf32>
    %102 = arith.select %54, %100, %101 : vector<4x256xi1>, vector<4x256xf32>
    %c44 = arith.constant 44 : index
    %c0_58 = arith.constant 0 : index
    %103 = vector.load %arg6[%c44, %c0_58] : memref<128x256xf32, #tpu.memory_space<vmem>>, vector<4x256xf32>
    tpu.vector_store %arg6[%c44, %c0_58], %102 {strides = array<i32>} : memref<128x256xf32, #tpu.memory_space<vmem>>, vector<4x256xf32>,
    %c0_59 = arith.constant 0 : index
    %c126 = arith.constant 126 : index
    %104 = vector.load %arg5[%c0_59, %c126] : memref<4x512xf32, #tpu.memory_space<vmem>>, vector<4x256xf32>
    %cst_60 = arith.constant 0.000000e+00 : f32
    %105 = vector.broadcast %cst_60 : f32 to vector<4x256xf32>
    %106 = arith.select %27, %104, %105 : vector<4x256xi1>, vector<4x256xf32>
    %c48 = arith.constant 48 : index
    %c0_61 = arith.constant 0 : index
    %107 = vector.load %arg6[%c48, %c0_61] : memref<128x256xf32, #tpu.memory_space<vmem>>, vector<4x256xf32>
    tpu.vector_store %arg6[%c48, %c0_61], %106 {strides = array<i32>} : memref<128x256xf32, #tpu.memory_space<vmem>>, vector<4x256xf32>,
    %c0_62 = arith.constant 0 : index
    %c128_63 = arith.constant 128 : index
    %108 = vector.load %arg5[%c0_62, %c128_63] : memref<4x512xf32, #tpu.memory_space<vmem>>, vector<4x256xf32>
    %c52 = arith.constant 52 : index
    %c0_64 = arith.constant 0 : index
    %109 = vector.load %arg6[%c52, %c0_64] : memref<128x256xf32, #tpu.memory_space<vmem>>, vector<4x256xf32>
    tpu.vector_store %arg6[%c52, %c0_64], %108 {strides = array<i32>} : memref<128x256xf32, #tpu.memory_space<vmem>>, vector<4x256xf32>,
    %c0_65 = arith.constant 0 : index
    %c130 = arith.constant 130 : index
    %110 = vector.load %arg5[%c0_65, %c130] : memref<4x512xf32, #tpu.memory_space<vmem>>, vector<4x256xf32>
    %cst_66 = arith.constant 0.000000e+00 : f32
    %111 = vector.broadcast %cst_66 : f32 to vector<4x256xf32>
    %112 = arith.select %54, %110, %111 : vector<4x256xi1>, vector<4x256xf32>
    %c56 = arith.constant 56 : index
    %c0_67 = arith.constant 0 : index
    %113 = vector.load %arg6[%c56, %c0_67] : memref<128x256xf32, #tpu.memory_space<vmem>>, vector<4x256xf32>
    tpu.vector_store %arg6[%c56, %c0_67], %112 {strides = array<i32>} : memref<128x256xf32, #tpu.memory_space<vmem>>, vector<4x256xf32>,
    %c0_68 = arith.constant 0 : index
    %c158 = arith.constant 158 : index
    %114 = vector.load %arg5[%c0_68, %c158] : memref<4x512xf32, #tpu.memory_space<vmem>>, vector<4x256xf32>
    %cst_69 = arith.constant 0.000000e+00 : f32
    %115 = vector.broadcast %cst_69 : f32 to vector<4x256xf32>
    %116 = arith.select %27, %114, %115 : vector<4x256xi1>, vector<4x256xf32>
    %c60 = arith.constant 60 : index
    %c0_70 = arith.constant 0 : index
    %117 = vector.load %arg6[%c60, %c0_70] : memref<128x256xf32, #tpu.memory_space<vmem>>, vector<4x256xf32>
    tpu.vector_store %arg6[%c60, %c0_70], %116 {strides = array<i32>} : memref<128x256xf32, #tpu.memory_space<vmem>>, vector<4x256xf32>,
    %c0_71 = arith.constant 0 : index
    %c160 = arith.constant 160 : index
    %118 = vector.load %arg5[%c0_71, %c160] : memref<4x512xf32, #tpu.memory_space<vmem>>, vector<4x256xf32>
    %c64 = arith.constant 64 : index
    %c0_72 = arith.constant 0 : index
    %119 = vector.load %arg6[%c64, %c0_72] : memref<128x256xf32, #tpu.memory_space<vmem>>, vector<4x256xf32>
    tpu.vector_store %arg6[%c64, %c0_72], %118 {strides = array<i32>} : memref<128x256xf32, #tpu.memory_space<vmem>>, vector<4x256xf32>,
    %c0_73 = arith.constant 0 : index
    %c162 = arith.constant 162 : index
    %120 = vector.load %arg5[%c0_73, %c162] : memref<4x512xf32, #tpu.memory_space<vmem>>, vector<4x256xf32>
    %cst_74 = arith.constant 0.000000e+00 : f32
    %121 = vector.broadcast %cst_74 : f32 to vector<4x256xf32>
    %122 = arith.select %54, %120, %121 : vector<4x256xi1>, vector<4x256xf32>
    %c68 = arith.constant 68 : index
    %c0_75 = arith.constant 0 : index
    %123 = vector.load %arg6[%c68, %c0_75] : memref<128x256xf32, #tpu.memory_space<vmem>>, vector<4x256xf32>
    tpu.vector_store %arg6[%c68, %c0_75], %122 {strides = array<i32>} : memref<128x256xf32, #tpu.memory_space<vmem>>, vector<4x256xf32>,
    %c0_76 = arith.constant 0 : index
    %c77 = arith.constant 77 : index
    %124 = vector.load %arg5[%c0_76, %c77] : memref<4x512xf32, #tpu.memory_space<vmem>>, vector<4x256xf32>
    %cst_77 = arith.constant 0.000000e+00 : f32
    %125 = vector.broadcast %cst_77 : f32 to vector<4x256xf32>
    %126 = arith.select %18, %124, %125 : vector<4x256xi1>, vector<4x256xf32>
    %c72 = arith.constant 72 : index
    %c0_78 = arith.constant 0 : index
    %127 = vector.load %arg6[%c72, %c0_78] : memref<128x256xf32, #tpu.memory_space<vmem>>, vector<4x256xf32>
    tpu.vector_store %arg6[%c72, %c0_78], %126 {strides = array<i32>} : memref<128x256xf32, #tpu.memory_space<vmem>>, vector<4x256xf32>,
    %c0_79 = arith.constant 0 : index
    %c80 = arith.constant 80 : index
    %128 = vector.load %arg5[%c0_79, %c80] : memref<4x512xf32, #tpu.memory_space<vmem>>, vector<4x256xf32>
    %c76 = arith.constant 76 : index
    %c0_80 = arith.constant 0 : index
    %129 = vector.load %arg6[%c76, %c0_80] : memref<128x256xf32, #tpu.memory_space<vmem>>, vector<4x256xf32>
    tpu.vector_store %arg6[%c76, %c0_80], %128 {strides = array<i32>} : memref<128x256xf32, #tpu.memory_space<vmem>>, vector<4x256xf32>,
    %c0_81 = arith.constant 0 : index
    %c83 = arith.constant 83 : index
    %130 = vector.load %arg5[%c0_81, %c83] : memref<4x512xf32, #tpu.memory_space<vmem>>, vector<4x256xf32>
    %cst_82 = arith.constant 0.000000e+00 : f32
    %131 = vector.broadcast %cst_82 : f32 to vector<4x256xf32>
    %132 = arith.select %63, %130, %131 : vector<4x256xi1>, vector<4x256xf32>
    %c80_83 = arith.constant 80 : index
    %c0_84 = arith.constant 0 : index
    %133 = vector.load %arg6[%c80_83, %c0_84] : memref<128x256xf32, #tpu.memory_space<vmem>>, vector<4x256xf32>
    tpu.vector_store %arg6[%c80_83, %c0_84], %132 {strides = array<i32>} : memref<128x256xf32, #tpu.memory_space<vmem>>, vector<4x256xf32>,
    %c0_85 = arith.constant 0 : index
    %c125 = arith.constant 125 : index
    %134 = vector.load %arg5[%c0_85, %c125] : memref<4x512xf32, #tpu.memory_space<vmem>>, vector<4x256xf32>
    %cst_86 = arith.constant 0.000000e+00 : f32
    %135 = vector.broadcast %cst_86 : f32 to vector<4x256xf32>
    %136 = arith.select %18, %134, %135 : vector<4x256xi1>, vector<4x256xf32>
    %c84 = arith.constant 84 : index
    %c0_87 = arith.constant 0 : index
    %137 = vector.load %arg6[%c84, %c0_87] : memref<128x256xf32, #tpu.memory_space<vmem>>, vector<4x256xf32>
    tpu.vector_store %arg6[%c84, %c0_87], %136 {strides = array<i32>} : memref<128x256xf32, #tpu.memory_space<vmem>>, vector<4x256xf32>,
    %c0_88 = arith.constant 0 : index
    %c128_89 = arith.constant 128 : index
    %138 = vector.load %arg5[%c0_88, %c128_89] : memref<4x512xf32, #tpu.memory_space<vmem>>, vector<4x256xf32>
    %c88 = arith.constant 88 : index
    %c0_90 = arith.constant 0 : index
    %139 = vector.load %arg6[%c88, %c0_90] : memref<128x256xf32, #tpu.memory_space<vmem>>, vector<4x256xf32>
    tpu.vector_store %arg6[%c88, %c0_90], %138 {strides = array<i32>} : memref<128x256xf32, #tpu.memory_space<vmem>>, vector<4x256xf32>,
    %c0_91 = arith.constant 0 : index
    %c131 = arith.constant 131 : index
    %140 = vector.load %arg5[%c0_91, %c131] : memref<4x512xf32, #tpu.memory_space<vmem>>, vector<4x256xf32>
    %cst_92 = arith.constant 0.000000e+00 : f32
    %141 = vector.broadcast %cst_92 : f32 to vector<4x256xf32>
    %142 = arith.select %63, %140, %141 : vector<4x256xi1>, vector<4x256xf32>
    %c92 = arith.constant 92 : index
    %c0_93 = arith.constant 0 : index
    %143 = vector.load %arg6[%c92, %c0_93] : memref<128x256xf32, #tpu.memory_space<vmem>>, vector<4x256xf32>
    tpu.vector_store %arg6[%c92, %c0_93], %142 {strides = array<i32>} : memref<128x256xf32, #tpu.memory_space<vmem>>, vector<4x256xf32>,
    %c0_94 = arith.constant 0 : index
    %c173 = arith.constant 173 : index
    %144 = vector.load %arg5[%c0_94, %c173] : memref<4x512xf32, #tpu.memory_space<vmem>>, vector<4x256xf32>
    %cst_95 = arith.constant 0.000000e+00 : f32
    %145 = vector.broadcast %cst_95 : f32 to vector<4x256xf32>
    %146 = arith.select %18, %144, %145 : vector<4x256xi1>, vector<4x256xf32>
    %c96_96 = arith.constant 96 : index
    %c0_97 = arith.constant 0 : index
    %147 = vector.load %arg6[%c96_96, %c0_97] : memref<128x256xf32, #tpu.memory_space<vmem>>, vector<4x256xf32>
    tpu.vector_store %arg6[%c96_96, %c0_97], %146 {strides = array<i32>} : memref<128x256xf32, #tpu.memory_space<vmem>>, vector<4x256xf32>,
    %c0_98 = arith.constant 0 : index
    %c176 = arith.constant 176 : index
    %148 = vector.load %arg5[%c0_98, %c176] : memref<4x512xf32, #tpu.memory_space<vmem>>, vector<4x256xf32>
    %c100 = arith.constant 100 : index
    %c0_99 = arith.constant 0 : index
    %149 = vector.load %arg6[%c100, %c0_99] : memref<128x256xf32, #tpu.memory_space<vmem>>, vector<4x256xf32>
    tpu.vector_store %arg6[%c100, %c0_99], %148 {strides = array<i32>} : memref<128x256xf32, #tpu.memory_space<vmem>>, vector<4x256xf32>,
    %c0_100 = arith.constant 0 : index
    %c179 = arith.constant 179 : index
    %150 = vector.load %arg5[%c0_100, %c179] : memref<4x512xf32, #tpu.memory_space<vmem>>, vector<4x256xf32>
    %cst_101 = arith.constant 0.000000e+00 : f32
    %151 = vector.broadcast %cst_101 : f32 to vector<4x256xf32>
    %152 = arith.select %63, %150, %151 : vector<4x256xi1>, vector<4x256xf32>
    %c104 = arith.constant 104 : index
    %c0_102 = arith.constant 0 : index
    %153 = vector.load %arg6[%c104, %c0_102] : memref<128x256xf32, #tpu.memory_space<vmem>>, vector<4x256xf32>
    tpu.vector_store %arg6[%c104, %c0_102], %152 {strides = array<i32>} : memref<128x256xf32, #tpu.memory_space<vmem>>, vector<4x256xf32>,
    %cst_103 = arith.constant 0.000000e+00 : f32
    %154 = vector.broadcast %cst_103 : f32 to vector<20x256xf32>
    %c108 = arith.constant 108 : index
    %c0_104 = arith.constant 0 : index
    %155 = vector.load %arg6[%c108, %c0_104] : memref<128x256xf32, #tpu.memory_space<vmem>>, vector<20x256xf32>
    tpu.vector_store %arg6[%c108, %c0_104], %154 {strides = array<i32>} : memref<128x256xf32, #tpu.memory_space<vmem>>, vector<20x256xf32>,
    %cst_105 = arith.constant 1.000000e+00 : f32
    %156 = vector.broadcast %cst_105 : f32 to vector<1x256xf32>
    %c108_106 = arith.constant 108 : index
    %c0_107 = arith.constant 0 : index
    %157 = vector.load %arg6[%c108_106, %c0_107] : memref<128x256xf32, #tpu.memory_space<vmem>>, vector<1x256xf32>
    tpu.vector_store %arg6[%c108_106, %c0_107], %156 {strides = array<i32>} : memref<128x256xf32, #tpu.memory_space<vmem>>, vector<1x256xf32>,
    %c0_108 = arith.constant 0 : index
    %c0_109 = arith.constant 0 : index
    %158 = vector.load %arg2[%c0_108, %c0_109] : memref<8x128xf32, #tpu.memory_space<vmem>>, vector<8x128xf32>
    %c0_110 = arith.constant 0 : index
    %c0_111 = arith.constant 0 : index
    %159 = vector.load %arg6[%c0_110, %c0_111] : memref<128x256xf32, #tpu.memory_space<vmem>>, vector<128x256xf32>
    %cst_112 = arith.constant dense<0.000000e+00> : vector<8x256xf32>
    %160 = tpu.matmul %158, %159, %cst_112 {dimension_numbers = #tpu.dot_dimension_numbers<[1], [0], [0], [1], [0, 0, 1, 1], [], []>} : vector<8x128xf32>, vector<128x256xf32>, vector<8x256xf32> -> vector<8x256xf32>
    %c0_113 = arith.constant 0 : index
    %c0_114 = arith.constant 0 : index
    %c0_115 = arith.constant 0 : index
    %161 = vector.load %arg4[%c0_113, %c0_114, %c0_115] : memref<1x8x256xf32, #tpu.memory_space<vmem>>, vector<1x8x256xf32>
    %162 = vector.shape_cast %161 : vector<1x8x256xf32> to vector<8x256xf32>
    %163 = vector.shape_cast %160 : vector<8x256xf32> to vector<1x8x256xf32>
    tpu.vector_store %arg4[%c0_113, %c0_114, %c0_115], %163 {strides = array<i32>} : memref<1x8x256xf32, #tpu.memory_space<vmem>>, vector<1x8x256xf32>,
    return
  }
  func.func @transform_0(%arg0: i32) -> (i32, i32, i32) {
    %c0_i32 = arith.constant 0 : i32
    %c0_i32_0 = arith.constant 0 : i32
    %c0_i32_1 = arith.constant 0 : i32
    return %arg0, %c0_i32, %c0_i32_0 : i32, i32, i32
  }
  func.func @transform_1(%arg0: i32) -> (i32, i32) {
    %c0_i32 = arith.constant 0 : i32
    %c0_i32_0 = arith.constant 0 : i32
    %c0_i32_1 = arith.constant 0 : i32
    return %c0_i32, %c0_i32_0 : i32, i32
  }
  func.func @transform_2(%arg0: i32) -> (i32, i32) {
    %c0_i32 = arith.constant 0 : i32
    %c0_i32_0 = arith.constant 0 : i32
    %c0_i32_1 = arith.constant 0 : i32
    return %c0_i32, %c0_i32_0 : i32, i32
  }
  func.func @transform_3(%arg0: i32) -> (i32, i32, i32) {
    %c0_i32 = arith.constant 0 : i32
    %c0_i32_0 = arith.constant 0 : i32
    %c0_i32_1 = arith.constant 0 : i32
    return %arg0, %c0_i32, %c0_i32_0 : i32, i32, i32
  }
}

</mosaic_0001>

<bundles_post_ra>
// kernel: tpu_custom_call.1
= control target key start
LH: loop header
LB: loop body
LE: loop exit
PB: predicated region body
PF: predicated region fallthrough
CT: control target
= control target key end

     0   :  { %8 = vsyncpa [#allocation5], 0  ;;  %s1710_s0 = inlined_call_operand.hbm [shape: f32[2,4,256], index: 0, kind: input, shape index: {}]   ;;  %s1711_s1 = inlined_call_operand.hbm [shape: f32[8,128], index: 1, kind: input, shape index: {}]   ;;  %s1712_s2 = inlined_call_operand.vmem [shape: s32[1,256], index: 2, kind: input, shape index: {}]   ;;  %s1713_s3 = inlined_call_operand.hbm [shape: f32[2,8,256], index: 3, kind: output, shape index: {}]  }
   0x1   :  { %10 = vsyncpa [#allocation5 + $0x1], 0 }
   0x2   :  { %11 = vsyncpa [#allocation8], 0 }
   0x3   :  { %12 = vsyncpa [#allocation6], 0 }
   0x4   :  { %14 = vsyncpa [#allocation6 + $0x1], 0  ;;  %s1295_s12 = smov 0   ;;  %s1297_s13 = smov 0  }
   0x5   :  { %s1299_s14 = smov 0   ;;  %s1301_s15 = smov 0  }
   0x6 LB: > { %s1316_s16 = sadd.s32 4294967295, %s1244_s15   ;;  %s1013_s17 = sadd.s32 4294967294, %s1244_s15   ;;  %s1244_s15 = sphi %s1301_s15, %s1760_s15   ;;  %s1240_s14 = sphi %s1299_s14, %s1759_s14   ;;  %s1236_s13 = sphi %s1297_s13, %s1758_s13   ;;  %s1232_s12 = sphi %s1295_s12, %s1757_s12  }
   0x7   : > { %p40_p0 = scmp.ne.s32.totalorder %s1236_s13, %s1232_s12  ;;  %p1714_p1 = scmp.eq.s32.totalorder %s1316_s16, 0 }
   0x8   : > { %p112_p3 = scmp.eq.s32.totalorder %s1013_s17, 1  ;;  %p1014_p5 = scmp.ge.s32.totalorder %s1244_s15, 1 }
   0x9   : > { %p1325_p4 = por %p1714_p1, %p40_p0  ;;  %p119_p7 = scmp.lt.s32.totalorder %s1244_s15, 3 }
   0xa   : > { %p1330_p6 = por %p112_p3, %p40_p0  ;;  %s1246_s21 = smov [#allocation7]  }
   0xb   : > { %s1718_s18 = scalar_select %p1325_p4, 1, 0 }
   0xc   : > { %s1719_s19 = scalar_select %p1330_p6, 1, 0 }
   0xd   : > { %p1335_p8 = pnand %p1014_p5, %p119_p7  ;;  %s132_s22 = sshll.u32 %s1246_s21, 4  ;;  %s133_s22 = int_to_ptr.vmem [resolvable:$true] %s132_s22 }
   0xe   : > { %s1343_s23 = sadd.s32 1, %s1244_s15   ;;  %s27_s27 = sadd.s32 1, %s1240_s14 }
   0xf   : > { %s1720_s20 = scalar_select %p1335_p8, 1, 0 }
  0x10   : > { %p1039_p10 = pneg %p1335_p8  ;;  %s24_s25 = ssub.s32 %s1244_s15, %s1343_s23 }
  0x11   : > { %p1353_p12 = scmp.eq.s32.totalorder %s24_s25, 0  ;;  %p34_p13 = scmp.ne.s32.totalorder %s1240_s14, %s1236_s13 }
  0x12   : > { %p1347_p11 = pnand %p1039_p10, %p1714_p1  ;;  %s1133_s28 = scalar_lea.vmem %s133_s22, 128 }
  0x13   : > { %p1134_p3 = scmp.ne.s32.totalorder %s133_s22, %s1133_s28  ;;  %p1141_p9 = scmp.lt.s32.totalorder %s133_s22, %s133_s22 }
  0x14   : > { %p1124_p0 = pneg %p1347_p11  ;;  %p1142_p2 = scmp.lt.s32.totalorder %s1133_s28, %s1133_s28 }
  0x16   : > { %p1136_p5 = pnand %p1134_p3, %p1124_p0  ;;  %p1143_p10 = por %p1142_p2, %p1141_p9 }
  0x18   : > { %p1137_p7 = pneg %p1136_p5 }
  0x1a   : > { %p1144_p1 = pnand %p1143_p10, %p1137_p7 }
  0x1c   : > { %1147 = shalt.err (!%p1144_p1)
}
  0x1d   : > { %1042 = dma.hbm_to_vmem [thread:$0]  (!%p1347_p11), %s1711_s1, 128, %s133_s22, [#allocation8]  }
  0x1e   : > { %s1370_s4 = scalar_select %p1353_p12, %s1240_s14, %s27_s27  }
  0x1f   : > { %p35_p1 = scmp.eq.s32.totalorder %s1244_s15, 0  ;;  %p1723_p2 = scmp.eq.s32.totalorder %s1316_s16, 1 }
  0x20   : > { %p1052_p0 = scmp.lt.s32.totalorder %s1244_s15, 2  ;;  %s146_s6 = sand.u32 1, %s1240_s14  }
  0x21   : > { %p1378_p9 = por %p1723_p2, %p34_p13  ;;  %p36_p3 = por %p35_p1, %p34_p13 }
  0x22   : > { %s1017_s7 = sshll.u32 %s146_s6, 3  ;;  %s1029_s8 = sshll.u32 %s1244_s15, 7 }
  0x23   : > { %s1724_s5 = scalar_select %p1378_p9, 1, 0 }
  0x24   : > { %s1391_s11 = scalar_lea.hbm %s1710_s0, %s1029_s8  ;;  %s150_s17 = scalar_lea.vmem [#allocation4], %s1017_s7 }
  0x25   : > { %s158_s21 = sshll.u32 %s150_s17, 4  ;;  %p1393_p11 = pnand %p1052_p0, %p36_p3  ;;  %s159_s21 = int_to_ptr.vmem [resolvable:$true] %s158_s21 }
  0x26   : > { %s147_s24 = scalar_lea.sflag [#allocation5], %s146_s6  ;;  %s1148_s25 = scalar_lea.hbm %s1391_s11, 128 }
  0x27   : > { %p1149_p12 = scmp.ne.s32.totalorder %s1391_s11, %s1148_s25  ;;  %p1150_p13 = pneg %p1393_p11 }
  0x28   : > { %s1153_s28 = scalar_lea.hbm %s1710_s0, 256  ;;  %p1154_p10 = scmp.lt.s32.totalorder %s1391_s11, %s1710_s0 }
  0x29   : > { %p1151_p5 = pnand %p1150_p13, %p1149_p12  ;;  %p1155_p1 = scmp.lt.s32.totalorder %s1153_s28, %s1148_s25 }
  0x2b   : > { %p1152_p7 = pneg %p1151_p5  ;;  %p1156_p2 = por %p1155_p1, %p1154_p10 }
  0x2d   : > { %p1157_p0 = pnand %p1156_p2, %p1152_p7 }
  0x2f   : > { %1160 = shalt.err (!%p1157_p0)
}
  0x30   : > { %s1161_s7 = scalar_lea.vmem %s159_s21, 128  ;;  %s1247_s6 = smov [#allocation4]  }
  0x31   : > { %p1162_p3 = scmp.ne.s32.totalorder %s159_s21, %s1161_s7  ;;  %s1166_s8 = sshll.u32 %s1247_s6, 4  ;;  %s1167_s8 = int_to_ptr.vmem [resolvable:$false] %s1166_s8 }
  0x32   : > { %s1168_s9 = scalar_lea.vmem %s1167_s8, 256  ;;  %p1169_p12 = scmp.lt.s32.totalorder %s159_s21, %s1167_s8 }
  0x33   : > { %p1164_p6 = pnand %p1162_p3, %p1150_p13  ;;  %p1170_p5 = scmp.lt.s32.totalorder %s1168_s9, %s1161_s7 }
  0x35   : > { %p1165_p9 = pneg %p1164_p6  ;;  %p1171_p4 = por %p1170_p5, %p1169_p12 }
  0x37   : > { %p1172_p8 = pnand %p1171_p4, %p1165_p9 }
  0x39   : > { %1175 = shalt.err (!%p1172_p8)
}
  0x3a   : > { %1046 = dma.hbm_to_vmem [thread:$0]  (!%p1393_p11), %s1391_s11, 128, %s159_s21, %s147_s24  }
  0x3b   : > { %p1726_p7 = scmp.ne.s32.totalorder %s1720_s20, 0 }
  0x3c   : > { %s1414_s10 = sand.u32 (!%p1726_p7), 1, %s1236_s13   ;;  %p1727_p6 = scmp.ne.s32.totalorder (!%p1726_p7), %s1718_s18, 0 }
  0x3d   : > { %167 = sbr.rel (%p1726_p7) target bundleno = 553 (0x229), region = 32  ;;  %s1021_s17 = sshll.u32 (!%p1726_p7), %s1414_s10, 3 }
  0x3e   : > { %s170_s25 = scalar_lea.sflag (!%p1726_p7), [#allocation5], %s1414_s10  ;;  %s173_s26 = scalar_lea.vmem (!%p1726_p7), [#allocation4], %s1021_s17 }
  0x42   : > { %1219 = dma.done.wait (%p1727_p6), %s170_s25, 128  }
  0x43   : > { %1221 = vsyncadd (%p1727_p6), %s170_s25, 4294967168  ;;  %p1728_p4 = scmp.eq.s32.totalorder %s1316_s16, 0 }
  0x45   : > { %1223 = dma.done.wait (%p1728_p4), [#allocation8], 128   ;;  %p1729_p8 = pmov %p1728_p4 }
  0x46   : > { %v1248_v0 = vmov 0.0   ;;  %v1426_v1 = vld [vmem:[%s173_s26] sm:$0xff]  ;;  %s1249_s18 = smov 77   ;;  %s1250_s20 = smov 125   ;;  %v205_v7 = vlaneseq  ;;  %v1253_v9 = vmov 1.0   ;;  %vm725_vm6 = vcmask 1022976  }
  0x47   : > { %1225 = vsyncadd (%p1729_p8), [#allocation8], 4294967168  ;;  %201 = vst [vmem:[#allocation2 + $0xc] sm:$0xf] %v1248_v0  ;;  %845 = vmatprep.subr.mxu0 %v1248_v0  ;;  %909 = vmatprep.mubr.f32.mxu0 %v1248_v0  ;;  %v1432_v3 = vcombine.high %v1426_v1, %v1426_v1  ;;  %v1436_v4 = vcombine.low %v1426_v1, %v1426_v1  ;;  %s1251_s11 = smov 80   ;;  %s1252_s21 = smov 83  }
  0x48   : > { %200 = vst [vmem:[#allocation2] sm:$0xf] %v1248_v0  ;;  %799 = vst [vmem:[#allocation3 + $0xd0] sm:$0xf0] %v1248_v0  ;;  %846 = vmatpush1.msra.mxu0 %v1248_v0  ;;  %784 = vrot.lane.b32.xlu1 %v1426_v1, %s1249_s18  ;;  %vm807_vm0 = vcmp.lt.s32.totalorder %v205_v7, 256  ;;  %s1254_s22 = smov 3  }
  0x49   : > { %800 = vst [vmem:[#allocation3 + $0xd8] sm:$0xf0] %v1248_v0  ;;  %847 = vmatprep.subr.mxu0 %v1248_v0  ;;  %203 = vst [vmem:[#allocation2 + $0x4] sm:$0xff] %v1426_v1  ;;  %s1255_s24 = smov 45   ;;  %s1256_s27 = smov 94   ;;  %v206_v27 = vshrl.u32 %v205_v7, 7 }
  0x4a   : > { %848 = vmatpush1.msra.mxu0 %v1248_v0  ;;  %712 = vst [vmem:[#allocation3 + $0xb0] sm:$0xf] %v1426_v1  ;;  %532 = vst [vmem:[#allocation3 + $0x68] sm:$0xf0] %v1426_v1  ;;  %s1257_s28 = smov 51   ;;  %s1258_s29 = smov 48  }
  0x4b   : > { %350 = vst [vmem:[#allocation3 + $0x20] sm:$0xf] %v1426_v1  ;;  %713 = vst [vmem:[#allocation3 + $0xb8] sm:$0xf] %v1432_v3  ;;  %s1259_s30 = smov 98   ;;  %s1260_s7 = smov 96  }
  0x4c   : > { %531 = vst [vmem:[#allocation3 + $0x60] sm:$0xf0] %v1436_v4  ;;  %351 = vst [vmem:[#allocation3 + $0x28] sm:$0xf] %v1432_v3  ;;  %719 = vrot.lane.b32.xlu1 %v1426_v1, %s1250_s20  ;;  %s1261_s6 = smov 126   ;;  %s1262_s8 = smov 30  }
  0x4d   : > { %810 = vst.msk [vmem:[#allocation3 + $0xd4] ss:$8 sm:$0x3] %vm807_vm0, %v1253_v9  ;;  %s1263_s9 = smov 2   ;;  %s1264_s17 = smov 34   ;;  %v207_v29 = vsub.s32 0, %v206_v27 }
  0x4e   : > { %v780_v2 = vld [vmem:[#allocation2 + $0xc] sm:$0xf]  ;;  %s1265_s25 = smov 32   ;;  %s1266_s26 = smov 111   ;;  %v204_v30 = vld [vmem:[%s1712_s2] sm:$0x3] }
  0x4f   : > { %788 = vrot.lane.b32.xlu0 %v780_v2, %s1249_s18  ;;  %v715_v5 = vld [vmem:[#allocation2 + $0xc] sm:$0xf]  ;;  %v211_v31 = vsub.s32 1, %v206_v27  ;;  %v1497_v33 = vrot.slane %v204_v30, %v207_v29  ;;  %vm751_vm13 = vcmask 678912   ;;  %vm790_vm14 = vcmask 629760   ;;  %p1754_p11 = scmp.ne.s32.totalorder %s1724_s5, 0 }
  0x50   : > { %v741_v6 = vld [vmem:[#allocation2 + $0xc] sm:$0xf]  ;;  %768 = vrot.lane.b32.xlu1 %v1426_v1, %s1251_s11  ;;  %v1449_v8 = vld [vmem:[#allocation2] sm:$0xff]  ;;  %v683_v12 = vld [vmem:[#allocation2 + $0x8] sm:$0xf]  ;;  %vm772_vm0 = vcmask 654336  }
  0x51   : > { %v1454_v10 = vcombine.high %v1449_v8, %v1449_v8  ;;  %v1116_v11 = vld [vmem:[#allocation2 + $0xc] ss:$0 sps:$4 sm:$0xff]   ;;  %v663_v13 = vld [vmem:[#allocation2 + $0x8] sm:$0xf]  ;;  %v1469_v18 = vcombine.low %v1449_v8, %v1449_v8  ;;  %v1499_v35 = vrot.slane %v204_v30, %v211_v31  ;;  %v253_v37 = vadd.s32 3, %v1497_v33 }
  0x52   : > { %v598_v14 = vld [vmem:[#allocation2 + $0xc] sm:$0xf]  ;;  %v624_v15 = vld [vmem:[#allocation2 + $0x8] sm:$0xf]  ;;  %v213_v42 = vadd.s32 4294967293, %v1497_v33  ;;  %v237_v55 = vadd.s32 1, %v1497_v33 }
  0x53   : > { %723 = vrot.lane.b32.xlu0 %v715_v5, %s1250_s20  ;;  %v1119_v16 = vld [vmem:[#allocation2 + $0x8] ss:$0 sps:$4 sm:$0xff]   ;;  %v554_v17 = vld [vmem:[#allocation2 + $0xc] sm:$0xf]  ;;  %v254_v40 = vadd.s32 3, %v1499_v35  ;;  %vm255_vm1 = vcmp.ge.s32.totalorder %v253_v37, 0 }
  0x54   : > { %721 = vrot.lane.b32.xlu1 %v1432_v3, %s1250_s20  ;;  %v580_v19 = vld [vmem:[#allocation2 + $0xc] sm:$0xf]  ;;  %v482_v21 = vld [vmem:[#allocation2 + $0x8] sm:$0xf]  ;;  %s1268_s20 = smov 113   ;;  %vm257_vm2 = vcmp.lt.s32.totalorder %v253_v37, 16 }
  0x55   : > { %v534_v20 = vld [vmem:[#allocation2 + $0xc] sm:$0xf]  ;;  %v508_v22 = vld [vmem:[#allocation2 + $0x8] sm:$0xf]  ;;  %vm256_vm3 = vcmp.ge.s32.totalorder %v254_v40, 0  ;;  %vm258_vm4 = vcmp.lt.s32.totalorder %v254_v40, 16  ;;  %vm1509_vm5 = vmand %vm255_vm1, %vm257_vm2 }
  0x56   : > { %v438_v23 = vld [vmem:[#allocation2 + $0x8] sm:$0xf]  ;;  %v418_v25 = vld [vmem:[#allocation2 + $0xc] sm:$0xf]  ;;  %v214_v44 = vadd.s32 4294967293, %v1499_v35  ;;  %vm1515_vm7 = vmand %vm256_vm3, %vm258_vm4  ;;  %vm215_vm8 = vcmp.ge.s32.totalorder %v213_v42, 0 }
  0x57   : > { %749 = vrot.lane.b32.xlu0 %v741_v6, %s1252_s21  ;;  %v464_v24 = vld [vmem:[#allocation2 + $0x8] sm:$0xf]  ;;  %v353_v26 = vld [vmem:[#allocation2 + $0xc] sm:$0xf]  ;;  %vm217_vm9 = vcmp.lt.s32.totalorder %v213_v42, 16  ;;  %vm693_vm1 = vcmask 23552  }
  0x58   : > { %747 = vrot.lane.b32.xlu1 %v1432_v3, %s1252_s21  ;;  %v379_v28 = vld [vmem:[#allocation2 + $0xc] sm:$0xf]  ;;  %v321_v38 = vld [vmem:[#allocation2 + $0x8] sm:$0xf]  ;;  %vm216_vm10 = vcmp.ge.s32.totalorder %v214_v44, 0  ;;  %vm218_vm11 = vcmp.lt.s32.totalorder %v214_v44, 16  ;;  %vm1524_vm12 = vmand %vm215_vm8, %vm217_vm9 }
  0x59   : > { %v1120_v32 = vld [vmem:[#allocation2 + $0xc] ss:$0 sps:$4 sm:$0xff]   ;;  %v301_v48 = vld [vmem:[#allocation2 + $0x8] sm:$0xf]  ;;  %vm1528_vm15 = vmand %vm216_vm10, %vm218_vm11  ;;  %vm673_vm2 = vcmask 367616   ;;  %vm655_vm11 = vcmask 392192  }
  0x5a   : > { %v262_v59 = vld [vmem:[#allocation2 + $0x8] sm:$0xf] }
  0x5b   : > { %745 = vrot.lane.b32.xlu0 %v1426_v1, %s1252_s21 }
  0x5c   : > { %689 = vrot.lane.b32.xlu1 %v1454_v10, %s1254_s22 }
  0x5f   : > { %786 = vrot.lane.b32.xlu0 %v1432_v3, %s1249_s18  ;;  %s1267_s18 = smov 127  }
  0x60   : > { %766 = vrot.lane.b32.xlu1 %v1436_v4, %s1251_s11 }
  0x63   : > { %770 = vrot.lane.b32.xlu0 %v1116_v11, %s1251_s11  ;;  %v1121_v11 = vld [vmem:[#allocation2 + $0x8] ss:$0 sps:$4 sm:$0xff]  }
  0x64   : > { %669 = vrot.lane.b32.xlu1 %v1454_v10, %s1255_s24 }
  0x67   : > { %691 = vrot.lane.b32.xlu0 %v683_v12, %s1254_s22 }
  0x68   : > { %667 = vrot.lane.b32.xlu1 %v1449_v8, %s1255_s24 }
  0x6b   : > { %687 = vrot.lane.b32.xlu0 %v1449_v8, %s1254_s22  ;;  %s1269_s22 = smov 112  }
  0x6c   : > { %606 = vrot.lane.b32.xlu1 %v598_v14, %s1256_s27 }
  0x6f   : > { %671 = vrot.lane.b32.xlu0 %v663_v13, %s1255_s24  ;;  %s1270_s24 = smov 1  }
  0x70   : > { %632 = vrot.lane.b32.xlu1 %v624_v15, %s1257_s28 }
  0x73   : > { %604 = vrot.lane.b32.xlu0 %v1432_v3, %s1256_s27 }
  0x74   : > { %628 = vrot.lane.b32.xlu1 %v1449_v8, %s1257_s28 }
  0x77   : > { %630 = vrot.lane.b32.xlu0 %v1454_v10, %s1257_s28  ;;  %s1272_s28 = smov 17  }
  0x78   : > { %653 = vrot.lane.b32.xlu1 %v1119_v16, %s1258_s29 }
  0x7b   : > { %602 = vrot.lane.b32.xlu0 %v1426_v1, %s1256_s27  ;;  %s1271_s27 = smov 15  }
  0x7c   : > { %562 = vrot.lane.b32.xlu1 %v554_v17, %s1259_s30 }
  0x7f   : > { %651 = vrot.lane.b32.xlu0 %v1449_v8, %s1258_s29 }
  0x80   : > { %558 = vrot.lane.b32.xlu1 %v1426_v1, %s1259_s30 }
  0x83   : > { %560 = vrot.lane.b32.xlu0 %v1432_v3, %s1259_s30  ;;  %s1023_s30 = sshll.u32 %s1414_s10, 4 }
  0x84   : > { %588 = vrot.lane.b32.xlu1 %v580_v19, %s1260_s7 }
  0x87   : > { %649 = vrot.lane.b32.xlu0 %v1469_v18, %s1258_s29  ;;  %s1273_s29 = smov 16  }
  0x88   : > { %542 = vrot.lane.b32.xlu1 %v534_v20, %s1261_s6 }
  0x8b   : > { %586 = vrot.lane.b32.xlu0 %v1432_v3, %s1260_s7 }
  0x8c   : > { %538 = vrot.lane.b32.xlu1 %v1426_v1, %s1261_s6 }
  0x8f   : > { %540 = vrot.lane.b32.xlu0 %v1432_v3, %s1261_s6 }
  0x90   : > { %490 = vrot.lane.b32.xlu1 %v482_v21, %s1262_s8  ;;  %v246_v21 = vadd.s32 2, %v1499_v35 }
  0x92   : > { %vm248_vm3 = vcmp.ge.s32.totalorder %v246_v21, 0  ;;  %vm250_vm4 = vcmp.lt.s32.totalorder %v246_v21, 16 }
  0x93   : > { %584 = vrot.lane.b32.xlu0 %v1426_v1, %s1260_s7  ;;  %vm1559_vm8 = vmand %vm248_vm3, %vm250_vm4  ;;  %vm590_vm3 = vcmask 785408   ;;  %vm544_vm4 = vcmask 1031168   ;;  %s199_s7 = scalar_lea.vmem [#allocation9], %s1023_s30 }
  0x94   : > { %516 = vrot.lane.b32.xlu1 %v508_v22, %s1263_s9  ;;  %s933_s6 = sshll.u32 %s199_s7, 4  ;;  %s1670_s6 = int_to_ptr.vmem [resolvable:$true] %s933_s6 }
  0x97   : > { %488 = vrot.lane.b32.xlu0 %v1454_v10, %s1262_s8 }
  0x98   : > { %512 = vrot.lane.b32.xlu1 %v1449_v8, %s1263_s9 }
  0x9b   : > { %514 = vrot.lane.b32.xlu0 %v1454_v10, %s1263_s9 }
  0x9c   : > { %446 = vrot.lane.b32.xlu1 %v438_v23, %s1264_s17 }
  0x9f   : > { %486 = vrot.lane.b32.xlu0 %v1449_v8, %s1262_s8  ;;  %s1030_s8 = sshll.u32 %s1316_s16, 8  ;;  %s1274_s16 = smov [#allocation9]  }
  0xa0   : > { %470 = vrot.lane.b32.xlu1 %v1454_v10, %s1265_s25 }
  0xa3   : > { %444 = vrot.lane.b32.xlu0 %v1454_v10, %s1264_s17 }
  0xa4   : > { %424 = vrot.lane.b32.xlu1 %v1432_v3, %s1266_s26 }
  0xa7   : > { %442 = vrot.lane.b32.xlu0 %v1449_v8, %s1264_s17 }
  0xa8   : > { %468 = vrot.lane.b32.xlu1 %v1449_v8, %s1265_s25 }
  0xab   : > { %472 = vrot.lane.b32.xlu0 %v464_v24, %s1265_s25  ;;  %s931_s25 = scalar_lea.hbm %s1713_s3, %s1030_s8 }
  0xac   : > { %359 = vrot.lane.b32.xlu1 %v1432_v3, %s1267_s18 }
  0xaf   : > { %426 = vrot.lane.b32.xlu0 %v418_v25, %s1266_s26 }
  0xb0   : > { %385 = vrot.lane.b32.xlu1 %v1432_v3, %s1268_s20 }
  0xb3   : > { %422 = vrot.lane.b32.xlu0 %v1426_v1, %s1266_s26  ;;  %s919_s26 = scalar_lea.sflag [#allocation6], %s1414_s10 }
  0xb4   : > { %357 = vrot.lane.b32.xlu1 %v1426_v1, %s1267_s18 }
  0xb7   : > { %361 = vrot.lane.b32.xlu0 %v353_v26, %s1267_s18  ;;  %s1176_s18 = scalar_lea.vmem %s1670_s6, 256 }
  0xb8   : > { %406 = vrot.lane.b32.xlu1 %v1426_v1, %s1269_s22  ;;  %p1177_p9 = scmp.ne.s32.totalorder %s1670_s6, %s1176_s18 }
  0xba   : > { %v785_v34 = vpop.permute.xlu1 %784  ;;  %p1178_p13 = pnand %p1177_p9, %p1754_p11 }
  0xbb   : > { %387 = vrot.lane.b32.xlu0 %v379_v28, %s1268_s20 }
  0xbc   : > { %327 = vrot.lane.b32.xlu1 %v1454_v10, %s1270_s24  ;;  %p1179_p10 = pneg %p1178_p13 }
  0xbe   : > { %v720_v39 = vpop.permute.xlu1 %719 }
  0xbf   : > { %383 = vrot.lane.b32.xlu0 %v1426_v1, %s1268_s20  ;;  %s1180_s20 = sshll.u32 %s1274_s16, 4  ;;  %s1181_s20 = int_to_ptr.vmem [resolvable:$false] %s1180_s20 }
  0xc0   : > { %404 = vrot.lane.b32.xlu1 %v1436_v4, %s1269_s22  ;;  %s1182_s11 = scalar_lea.vmem %s1181_s20, 512  ;;  %p1183_p1 = scmp.lt.s32.totalorder %s1670_s6, %s1181_s20 }
  0xc1   : > { %v789_v36 = vpop.permute.xlu0 %788  ;;  %p1184_p2 = scmp.lt.s32.totalorder %s1182_s11, %s1176_s18 }
  0xc2   : > { %v1506_v43 = vpop.permute.xlu1 %768 }
  0xc3   : > { %408 = vrot.lane.b32.xlu0 %v1120_v32, %s1269_s22  ;;  %p1185_p0 = por %p1184_p2, %p1183_p1 }
  0xc4   : > { %307 = vrot.lane.b32.xlu1 %v1454_v10, %s1271_s27 }
  0xc5   : > { %v724_v41 = vpop.permute.xlu0 %723  ;;  %p1186_p3 = pnand %p1185_p0, %p1179_p10 }
  0xc6   : > { %v722_v49 = vpop.permute.xlu1 %721 }
  0xc7   : > { %329 = vrot.lane.b32.xlu0 %v321_v38, %s1270_s24  ;;  %v726_v51 = vsel %vm725_vm6, %v720_v39, %v722_v49  ;;  %v727_v52 = vsel %vm725_vm6, %v722_v49, %v724_v41  ;;  %vm608_vm6 = vcmask 769024   ;;  %v245_v39 = vadd.s32 2, %v1497_v33 }
  0xc8   : > { %v730_v53 = vsel %vm1509_vm5, %v726_v51, 0.0  ;;  %v731_v54 = vsel %vm1515_vm7, %v727_v52, 0.0  ;;  %305 = vrot.lane.b32.xlu1 %v1449_v8, %s1271_s27 }
  0xc9   : > { %v750_v45 = vpop.permute.xlu0 %749  ;;  %v734_v56 = vrot.slane %v730_v53, 4  ;;  %v735_v57 = vrot.slane %v731_v54, 4  ;;  %vm249_vm9 = vcmp.lt.s32.totalorder %v245_v39, 16  ;;  %v222_v53 = vadd.s32 4294967294, %v1499_v35 }
  0xca   : > { %v748_v60 = vpop.permute.xlu1 %747 }
  0xcb   : > { %325 = vrot.lane.b32.xlu0 %v1449_v8, %s1270_s24  ;;  %738 = vst [vmem:[#allocation3 + $0xb0] sm:$0xf0] %v734_v56  ;;  %739 = vst [vmem:[#allocation3 + $0xb8] sm:$0xf0] %v735_v57  ;;  %v753_v63 = vsel %vm751_vm13, %v748_v60, %v750_v45 }
  0xcc   : > { %v757_v3 = vsel %vm1528_vm15, %v753_v63, 0.0  ;;  %270 = vrot.lane.b32.xlu1 %v262_v59, %s1272_s28 }
  0xcd   : > { %v746_v50 = vpop.permute.xlu0 %745  ;;  %759 = vst [vmem:[#allocation3 + $0xc8] sm:$0xf] %v757_v3 }
  0xce   : > { %v752_v62 = vsel %vm751_vm13, %v746_v50, %v748_v60  ;;  %v690_v6 = vpop.permute.xlu1 %689  ;;  %v221_v60 = vadd.s32 4294967294, %v1497_v33  ;;  %vm224_vm13 = vcmp.ge.s32.totalorder %v222_v53, 0 }
  0xcf   : > { %309 = vrot.lane.b32.xlu0 %v301_v48, %s1271_s27  ;;  %v756_v2 = vsel %vm1524_vm12, %v752_v62, 0.0 }
  0xd0   : > { %758 = vst [vmem:[#allocation3 + $0xc0] sm:$0xf] %v756_v2  ;;  %289 = vrot.lane.b32.xlu1 %v1449_v8, %s1273_s29 }
  0xd1   : > { %v787_v61 = vpop.permute.xlu0 %786 }
  0xd2   : > { %v791_v0 = vsel %vm790_vm14, %v785_v34, %v787_v61  ;;  %v792_v1 = vsel %vm790_vm14, %v787_v61, %v789_v36  ;;  %v767_v12 = vpop.permute.xlu1 %766  ;;  %v836_v31 = vld [vmem:[#allocation3 + $0xb8] sm:$0xff]  ;;  %v835_v34 = vld [vmem:[#allocation3 + $0xb0] sm:$0xff]  ;;  %vm226_vm14 = vcmp.lt.s32.totalorder %v222_v53, 16 }
  0xd3   : > { %v795_v4 = vsel %vm1509_vm5, %v791_v0, 0.0  ;;  %v796_v5 = vsel %vm1515_vm7, %v792_v1, 0.0  ;;  %268 = vrot.lane.b32.xlu0 %v1454_v10, %s1272_s28  ;;  %v773_v10 = vsel %vm772_vm0, %v767_v12, %v1506_v43 }
  0xd4   : > { %797 = vst [vmem:[#allocation3 + $0xd0] sm:$0xf] %v795_v4  ;;  %798 = vst [vmem:[#allocation3 + $0xd8] sm:$0xf] %v796_v5  ;;  %287 = vrot.lane.b32.xlu1 %v1469_v18, %s1273_s29 }
  0xd5   : > { %v771_v7 = vpop.permute.xlu0 %770  ;;  %777 = vst [vmem:[#allocation3 + $0xc0] sm:$0xf0] %v773_v10 }
  0xd6   : > { %v774_v9 = vsel %vm772_vm0, %v1506_v43, %v771_v7  ;;  %v670_v19 = vpop.permute.xlu1 %669  ;;  %vm1583_vm0 = vmand %vm224_vm13, %vm226_vm14  ;;  %vm239_vm14 = vcmp.ge.s32.totalorder %v237_v55, 0 }
  0xd7   : > { %778 = vst [vmem:[#allocation3 + $0xc8] sm:$0xf0] %v774_v9  ;;  %266 = vrot.lane.b32.xlu0 %v1449_v8, %s1272_s28 }
  0xd9   : > { %v692_v13 = vpop.permute.xlu0 %691 }
  0xda   : > { %v695_v14 = vsel %vm693_vm1, %v690_v6, %v692_v13  ;;  %v668_v25 = vpop.permute.xlu1 %667 }
  0xdb   : > { %v840_v15 = vld [vmem:[#allocation3 + $0xd8] sm:$0xff]  ;;  %v699_v16 = vsel %vm1528_vm15, %v695_v14, 0.0  ;;  %v839_v17 = vld [vmem:[#allocation3 + $0xd0] sm:$0xff]  ;;  %291 = vrot.lane.b32.xlu0 %v1121_v11, %s1273_s29  ;;  %v674_v27 = vsel %vm673_vm2, %v668_v25, %v670_v19 }
  0xdc   : > { %849 = vmatprep.subr.mxu0 %v840_v15  ;;  %v703_v8 = vrot.slane %v699_v16, 4  ;;  %v837_v28 = vld [vmem:[#allocation3 + $0xc0] sm:$0xff]  ;;  %v678_v30 = vsel %vm1509_vm5, %v674_v27, 0.0  ;;  %vm634_vm5 = vcmask 416768  }
  0xdd   : > { %850 = vmatpush1.msra.mxu0 %v839_v17  ;;  %v688_v20 = vpop.permute.xlu0 %687  ;;  %680 = vst [vmem:[#allocation3 + $0xa0] sm:$0xf] %v678_v30 }
  0xde   : > { %707 = vst [vmem:[#allocation3 + $0xa8] sm:$0xf0] %v703_v8  ;;  %v694_v22 = vsel %vm693_vm1, %v688_v20, %v690_v6  ;;  %v838_v23 = vld [vmem:[#allocation3 + $0xc8] sm:$0xff]  ;;  %v607_v37 = vpop.permute.xlu1 %606  ;;  %vm225_vm1 = vcmp.lt.s32.totalorder %v221_v60, 16 }
  0xdf   : > { %v698_v18 = vsel %vm1524_vm12, %v694_v22, 0.0  ;;  %851 = vmatprep.subr.mxu0 %v838_v23 }
  0xe0   : > { %v702_v24 = vrot.slane %v698_v18, 4  ;;  %852 = vmatpush1.msra.mxu0 %v837_v28 }
  0xe1   : > { %v672_v26 = vpop.permute.xlu0 %671  ;;  %853 = vmatprep.subr.mxu0 %v836_v31 }
  0xe2   : > { %706 = vst [vmem:[#allocation3 + $0xa0] sm:$0xf0] %v702_v24  ;;  %v675_v29 = vsel %vm673_vm2, %v670_v19, %v672_v26  ;;  %854 = vmatpush1.msra.mxu0 %v835_v34  ;;  %v633_v43 = vpop.permute.xlu1 %632 }
  0xe3   : > { %v679_v32 = vsel %vm1515_vm7, %v675_v29, 0.0  ;;  %vm247_vm7 = vcmp.ge.s32.totalorder %v245_v39, 0 }
  0xe4   : > { %681 = vst [vmem:[#allocation3 + $0xa8] sm:$0xf] %v679_v32  ;;  %vm1570_vm10 = vmand %vm247_vm7, %vm249_vm9  ;;  %vm474_vm7 = vcmask 261120  }
  0xe5   : > { %v605_v38 = vpop.permute.xlu0 %604 }
  0xe6   : > { %v610_v40 = vsel %vm608_vm6, %v605_v38, %v607_v37  ;;  %v629_v50 = vpop.permute.xlu1 %628 }
  0xe7   : > { %v614_v41 = vsel %vm1559_vm8, %v610_v40, 0.0 }
  0xe8   : > { %v618_v42 = vrot.slane %v614_v41, 4 }
  0xe9   : > { %v631_v44 = vpop.permute.xlu0 %630  ;;  %v833_v49 = vld [vmem:[#allocation3 + $0xa0] sm:$0xff] }
  0xea   : > { %622 = vst [vmem:[#allocation3 + $0x88] sm:$0xf0] %v618_v42  ;;  %v636_v45 = vsel %vm634_vm5, %v631_v44, %v633_v43  ;;  %v635_v52 = vsel %vm634_vm5, %v629_v50, %v631_v44  ;;  %v654_v59 = vpop.permute.xlu1 %653  ;;  %vm518_vm5 = vcmask 15360  }
  0xeb   : > { %v834_v46 = vld [vmem:[#allocation3 + $0xa8] sm:$0xff]  ;;  %v640_v47 = vsel %vm1528_vm15, %v636_v45, 0.0  ;;  %v639_v56 = vsel %vm1524_vm12, %v635_v52, 0.0  ;;  %vm564_vm15 = vcmask 801792   ;;  %vm223_vm12 = vcmp.ge.s32.totalorder %v221_v60, 0 }
  0xec   : > { %855 = vmatprep.subr.mxu0 %v834_v46  ;;  %642 = vst [vmem:[#allocation3 + $0x98] sm:$0xf] %v640_v47  ;;  %641 = vst [vmem:[#allocation3 + $0x90] sm:$0xf] %v639_v56 }
  0xed   : > { %v603_v51 = vpop.permute.xlu0 %602  ;;  %856 = vmatpush1.msra.mxu0 %v833_v49  ;;  %vm1589_vm2 = vmand %vm223_vm12, %vm225_vm1  ;;  %vm363_vm12 = vcmask 1039360  }
  0xee   : > { %v609_v54 = vsel %vm608_vm6, %v603_v51, %v605_v38  ;;  %v563_v63 = vpop.permute.xlu1 %562  ;;  %vm492_vm6 = vcmask 244736  }
  0xef   : > { %v613_v57 = vsel %vm1570_vm10, %v609_v54, 0.0 }
  0xf0   : > { %v617_v58 = vrot.slane %v613_v57, 4  ;;  %v238_v57 = vadd.s32 1, %v1499_v35 }
  0xf1   : > { %v652_v61 = vpop.permute.xlu0 %651 }
  0xf2   : > { %621 = vst [vmem:[#allocation3 + $0x80] sm:$0xf0] %v617_v58  ;;  %v657_v62 = vsel %vm655_vm11, %v652_v61, %v654_v59  ;;  %v559_v5 = vpop.permute.xlu1 %558  ;;  %vm240_vm9 = vcmp.ge.s32.totalorder %v238_v57, 0 }
  0xf3   : > { %661 = vst [vmem:[#allocation3 + $0x98] sm:$0xf0] %v657_v62 }
  0xf5   : > { %v561_v0 = vpop.permute.xlu0 %560 }
  0xf6   : > { %v566_v1 = vsel %vm564_vm15, %v561_v0, %v563_v63  ;;  %v565_v7 = vsel %vm564_vm15, %v559_v5, %v561_v0  ;;  %v589_v10 = vpop.permute.xlu1 %588  ;;  %vm241_vm15 = vcmp.lt.s32.totalorder %v237_v55, 16 }
  0xf7   : > { %v570_v2 = vsel %vm1583_vm0, %v566_v1, 0.0  ;;  %v569_v11 = vsel %vm1589_vm2, %v565_v7, 0.0 }
  0xf8   : > { %v574_v4 = vrot.slane %v570_v2, 4  ;;  %v573_v13 = vrot.slane %v569_v11, 4  ;;  %v230_v11 = vadd.s32 4294967295, %v1499_v35 }
  0xf9   : > { %v650_v6 = vpop.permute.xlu0 %649 }
  0xfa   : > { %v656_v9 = vsel %vm655_vm11, %v650_v6, %v652_v61  ;;  %578 = vst [vmem:[#allocation3 + $0x78] sm:$0xf0] %v574_v4  ;;  %v832_v12 = vld [vmem:[#allocation3 + $0x98] sm:$0xff]  ;;  %577 = vst [vmem:[#allocation3 + $0x70] sm:$0xf0] %v573_v13  ;;  %v543_v16 = vpop.permute.xlu1 %542  ;;  %vm428_vm11 = vcmask 908288  }
  0xfb   : > { %660 = vst [vmem:[#allocation3 + $0x90] sm:$0xf0] %v656_v9  ;;  %857 = vmatprep.subr.mxu0 %v832_v12  ;;  %vm232_vm1 = vcmp.ge.s32.totalorder %v230_v11, 0 }
  0xfd   : > { %v587_v14 = vpop.permute.xlu0 %586 }
  0xfe   : > { %v592_v15 = vsel %vm590_vm3, %v587_v14, %v589_v10  ;;  %v539_v21 = vpop.permute.xlu1 %538 }
  0xff   : > { %596 = vst [vmem:[#allocation3 + $0x88] sm:$0xf] %v592_v15 }
 0x101   : > { %v541_v17 = vpop.permute.xlu0 %540 }
 0x102   : > { %v831_v8 = vld [vmem:[#allocation3 + $0x90] sm:$0xff]  ;;  %v546_v19 = vsel %vm544_vm4, %v541_v17, %v543_v16  ;;  %v545_v23 = vsel %vm544_vm4, %v539_v21, %v541_v17  ;;  %v491_v26 = vpop.permute.xlu1 %490  ;;  %v229_v16 = vadd.s32 4294967295, %v1497_v33 }
 0x103   : > { %858 = vmatpush1.msra.mxu0 %v831_v8  ;;  %v550_v20 = vsel %vm1559_vm8, %v546_v19, 0.0  ;;  %v549_v24 = vsel %vm1570_vm10, %v545_v23, 0.0 }
 0x104   : > { %552 = vst [vmem:[#allocation3 + $0x78] sm:$0xf] %v550_v20  ;;  %551 = vst [vmem:[#allocation3 + $0x70] sm:$0xf] %v549_v24 }
 0x105   : > { %v585_v22 = vpop.permute.xlu0 %584 }
 0x106   : > { %v591_v18 = vsel %vm590_vm3, %v585_v22, %v587_v14  ;;  %v830_v25 = vld [vmem:[#allocation3 + $0x88] sm:$0xff]  ;;  %v517_v31 = vpop.permute.xlu1 %516  ;;  %vm389_vm3 = vcmask 924672  }
 0x107   : > { %595 = vst [vmem:[#allocation3 + $0x80] sm:$0xf] %v591_v18  ;;  %859 = vmatprep.subr.mxu0 %v830_v25 }
 0x109   : > { %v489_v27 = vpop.permute.xlu0 %488 }
 0x10a   : > { %v494_v28 = vsel %vm492_vm6, %v489_v27, %v491_v26  ;;  %v513_v41 = vpop.permute.xlu1 %512 }
 0x10b   : > { %v498_v29 = vsel %vm1559_vm8, %v494_v28, 0.0  ;;  %v828_v38 = vld [vmem:[#allocation3 + $0x78] sm:$0xff]  ;;  %v827_v40 = vld [vmem:[#allocation3 + $0x70] sm:$0xff]  ;;  %vm448_vm8 = vcmask 277504  }
 0x10c   : > { %v502_v30 = vrot.slane %v498_v29, 4 }
 0x10d   : > { %v515_v32 = vpop.permute.xlu0 %514 }
 0x10e   : > { %v829_v34 = vld [vmem:[#allocation3 + $0x80] sm:$0xff]  ;;  %506 = vst [vmem:[#allocation3 + $0x58] sm:$0xf0] %v502_v30  ;;  %v520_v37 = vsel %vm518_vm5, %v515_v32, %v517_v31  ;;  %v519_v36 = vsel %vm518_vm5, %v513_v41, %v515_v32  ;;  %v447_v47 = vpop.permute.xlu1 %446  ;;  %vm233_vm5 = vcmp.lt.s32.totalorder %v229_v16, 16 }
 0x10f   : > { %860 = vmatpush1.msra.mxu0 %v829_v34  ;;  %v524_v39 = vsel %vm1583_vm0, %v520_v37, 0.0  ;;  %v523_v44 = vsel %vm1589_vm2, %v519_v36, 0.0 }
 0x110   : > { %861 = vmatprep.subr.mxu0 %v828_v38  ;;  %526 = vst [vmem:[#allocation3 + $0x68] sm:$0xf] %v524_v39  ;;  %525 = vst [vmem:[#allocation3 + $0x60] sm:$0xf] %v523_v44 }
 0x111   : > { %v487_v42 = vpop.permute.xlu0 %486  ;;  %862 = vmatpush1.msra.mxu0 %v827_v40 }
 0x112   : > { %v493_v43 = vsel %vm492_vm6, %v487_v42, %v489_v27  ;;  %v471_v54 = vpop.permute.xlu1 %470  ;;  %vm231_vm6 = vcmp.ge.s32.totalorder %v229_v16, 0 }
 0x113   : > { %v497_v45 = vsel %vm1570_vm10, %v493_v43, 0.0  ;;  %vm242_vm10 = vcmp.lt.s32.totalorder %v238_v57, 16 }
 0x114   : > { %v501_v46 = vrot.slane %v497_v45, 4  ;;  %vm1621_vm13 = vmand %vm240_vm9, %vm242_vm10  ;;  %vm331_vm9 = vcmask 7168   ;;  %vm311_vm10 = vcmask 121856  }
 0x115   : > { %v445_v49 = vpop.permute.xlu0 %444 }
 0x116   : > { %505 = vst [vmem:[#allocation3 + $0x50] sm:$0xf0] %v501_v46  ;;  %v450_v50 = vsel %vm448_vm8, %v445_v49, %v447_v47  ;;  %v425_v61 = vpop.permute.xlu1 %424 }
 0x117   : > { %v454_v51 = vsel %vm1583_vm0, %v450_v50, 0.0  ;;  %v826_v52 = vld [vmem:[#allocation3 + $0x68] sm:$0xff]  ;;  %v825_v48 = vld [vmem:[#allocation3 + $0x60] sm:$0xff]  ;;  %vm1628_vm0 = vmand %vm239_vm14, %vm241_vm15  ;;  %vm293_vm14 = vcmask 130048  }
 0x118   : > { %v458_v53 = vrot.slane %v454_v51, 4  ;;  %863 = vmatprep.subr.mxu0 %v826_v52 }
 0x119   : > { %v443_v56 = vpop.permute.xlu0 %442  ;;  %864 = vmatpush1.msra.mxu0 %v825_v48 }
 0x11a   : > { %v449_v58 = vsel %vm448_vm8, %v443_v56, %v445_v49  ;;  %462 = vst [vmem:[#allocation3 + $0x48] sm:$0xf0] %v458_v53  ;;  %v469_v1 = vpop.permute.xlu1 %468  ;;  %vm1649_vm8 = vmand %vm231_vm6, %vm233_vm5 }
 0x11b   : > { %v453_v59 = vsel %vm1589_vm2, %v449_v58, 0.0  ;;  %v475_v3 = vsel %vm474_vm7, %v469_v1, %v471_v54  ;;  %vm234_vm2 = vcmp.lt.s32.totalorder %v230_v11, 16 }
 0x11c   : > { %v457_v60 = vrot.slane %v453_v59, 4  ;;  %479 = vst [vmem:[#allocation3 + $0x50] sm:$0xf] %v475_v3  ;;  %vm1639_vm4 = vmand %vm232_vm1, %vm234_vm2 }
 0x11d   : > { %v473_v62 = vpop.permute.xlu0 %472 }
 0x11e   : > { %461 = vst [vmem:[#allocation3 + $0x40] sm:$0xf0] %v457_v60  ;;  %v476_v63 = vsel %vm474_vm7, %v471_v54, %v473_v62  ;;  %v360_v7 = vpop.permute.xlu1 %359  ;;  %vm410_vm7 = vcmask 916480  }
 0x11f   : > { %480 = vst [vmem:[#allocation3 + $0x58] sm:$0xf] %v476_v63 }
 0x121   : > { %v427_v2 = vpop.permute.xlu0 %426 }
 0x122   : > { %v430_v4 = vsel %vm428_vm11, %v425_v61, %v427_v2  ;;  %v386_v14 = vpop.permute.xlu1 %385 }
 0x123   : > { %v434_v5 = vsel %vm1621_vm13, %v430_v4, 0.0  ;;  %v823_v17 = vld [vmem:[#allocation3 + $0x50] sm:$0xff] }
 0x124   : > { %436 = vst [vmem:[#allocation3 + $0x48] sm:$0xf] %v434_v5 }
 0x125   : > { %v423_v9 = vpop.permute.xlu0 %422 }
 0x126   : > { %v429_v12 = vsel %vm428_vm11, %v423_v9, %v425_v61  ;;  %v824_v13 = vld [vmem:[#allocation3 + $0x58] sm:$0xff]  ;;  %v358_v22 = vpop.permute.xlu1 %357  ;;  %vm272_vm11 = vcmask 138240  }
 0x127   : > { %v433_v10 = vsel %vm1628_vm0, %v429_v12, 0.0  ;;  %865 = vmatprep.subr.mxu0 %v824_v13  ;;  %v364_v33 = vsel %vm363_vm12, %v358_v22, %v360_v7  ;;  %v812_v12 = vld [vmem:[#allocation7] sm:$0xff] }
 0x128   : > { %435 = vst [vmem:[#allocation3 + $0x40] sm:$0xf] %v433_v10  ;;  %866 = vmatpush1.msra.mxu0 %v823_v17  ;;  %v368_v24 = vsel %vm1628_vm0, %v364_v33, 0.0 }
 0x129   : > { %v362_v15 = vpop.permute.xlu0 %361  ;;  %v372_v26 = vrot.slane %v368_v24, 4 }
 0x12a   : > { %v365_v8 = vsel %vm363_vm12, %v360_v7, %v362_v15  ;;  %v407_v29 = vpop.permute.xlu1 %406 }
 0x12b   : > { %v369_v35 = vsel %vm1621_vm13, %v365_v8, 0.0  ;;  %v822_v19 = vld [vmem:[#allocation3 + $0x48] sm:$0xff]  ;;  %376 = vst [vmem:[#allocation3 + $0x20] sm:$0xf0] %v372_v26 }
 0x12c   : > { %v373_v20 = vrot.slane %v369_v35, 4  ;;  %867 = vmatprep.subr.mxu0 %v822_v19 }
 0x12d   : > { %v388_v23 = vpop.permute.xlu0 %387 }
 0x12e   : > { %377 = vst [vmem:[#allocation3 + $0x28] sm:$0xf0] %v373_v20  ;;  %v391_v18 = vsel %vm389_vm3, %v386_v14, %v388_v23  ;;  %v328_v34 = vpop.permute.xlu1 %327 }
 0x12f   : > { %v395_v25 = vsel %vm1639_vm4, %v391_v18, 0.0  ;;  %v821_v27 = vld [vmem:[#allocation3 + $0x40] sm:$0xff] }
 0x130   : > { %397 = vst [vmem:[#allocation3 + $0x38] sm:$0xf] %v395_v25  ;;  %868 = vmatpush1.msra.mxu0 %v821_v27 }
 0x131   : > { %v384_v30 = vpop.permute.xlu0 %383 }
 0x132   : > { %v390_v31 = vsel %vm389_vm3, %v384_v30, %v386_v14  ;;  %v405_v39 = vpop.permute.xlu1 %404  ;;  %v817_v59 = vld [vmem:[#allocation3 + $0x20] sm:$0xff] }
 0x133   : > { %v394_v32 = vsel %vm1649_vm8, %v390_v31, 0.0  ;;  %v411_v41 = vsel %vm410_vm7, %v405_v39, %v407_v29 }
 0x134   : > { %396 = vst [vmem:[#allocation3 + $0x30] sm:$0xf] %v394_v32  ;;  %415 = vst [vmem:[#allocation3 + $0x30] sm:$0xf0] %v411_v41 }
 0x135   : > { %v409_v37 = vpop.permute.xlu0 %408  ;;  %v818_v58 = vld [vmem:[#allocation3 + $0x28] sm:$0xff] }
 0x136   : > { %v412_v38 = vsel %vm410_vm7, %v407_v29, %v409_v37  ;;  %v308_v44 = vpop.permute.xlu1 %307 }
 0x137   : > { %416 = vst [vmem:[#allocation3 + $0x38] sm:$0xf0] %v412_v38 }
 0x139   : > { %v330_v40 = vpop.permute.xlu0 %329 }
 0x13a   : > { %v333_v42 = vsel %vm331_vm9, %v328_v34, %v330_v40  ;;  %v306_v51 = vpop.permute.xlu1 %305 }
 0x13b   : > { %v337_v36 = vsel %vm1639_vm4, %v333_v42, 0.0  ;;  %v312_v53 = vsel %vm311_vm10, %v306_v51, %v308_v44  ;;  %v819_v54 = vld [vmem:[#allocation3 + $0x30] sm:$0xff] }
 0x13c   : > { %v341_v43 = vrot.slane %v337_v36, 4  ;;  %v316_v57 = vsel %vm1628_vm0, %v312_v53, 0.0 }
 0x13d   : > { %v326_v45 = vpop.permute.xlu0 %325  ;;  %318 = vst [vmem:[#allocation3 + $0x10] sm:$0xf] %v316_v57 }
 0x13e   : > { %345 = vst [vmem:[#allocation3 + $0x18] sm:$0xf0] %v341_v43  ;;  %v332_v46 = vsel %vm331_vm9, %v326_v45, %v328_v34  ;;  %v820_v47 = vld [vmem:[#allocation3 + $0x38] sm:$0xff]  ;;  %v271_v60 = vpop.permute.xlu1 %270 }
 0x13f   : > { %v336_v49 = vsel %vm1649_vm8, %v332_v46, 0.0  ;;  %869 = vmatprep.subr.mxu0 %v820_v47 }
 0x140   : > { %v340_v50 = vrot.slane %v336_v49, 4  ;;  %870 = vmatpush1.msra.mxu0 %v819_v54 }
 0x141   : > { %v310_v52 = vpop.permute.xlu0 %309  ;;  %871 = vmatprep.subr.mxu0 %v818_v58 }
 0x142   : > { %344 = vst [vmem:[#allocation3 + $0x10] sm:$0xf0] %v340_v50  ;;  %v313_v56 = vsel %vm311_vm10, %v308_v44, %v310_v52  ;;  %872 = vmatpush1.msra.mxu0 %v817_v59  ;;  %v290_v63 = vpop.permute.xlu1 %289 }
 0x143   : > { %v317_v48 = vsel %vm1621_vm13, %v313_v56, 0.0 }
 0x144   : > { %319 = vst [vmem:[#allocation3 + $0x18] sm:$0xf] %v317_v48 }
 0x145   : > { %v269_v61 = vpop.permute.xlu0 %268 }
 0x146   : > { %v274_v62 = vsel %vm272_vm11, %v269_v61, %v271_v60  ;;  %v288_v5 = vpop.permute.xlu1 %287 }
 0x147   : > { %v278_v55 = vsel %vm1639_vm4, %v274_v62, 0.0  ;;  %v294_v7 = vsel %vm293_vm14, %v288_v5, %v290_v63 }
 0x148   : > { %280 = vst [vmem:[#allocation3 + $0x8] sm:$0xf] %v278_v55  ;;  %298 = vst [vmem:[#allocation3] sm:$0xf0] %v294_v7 }
 0x149   : > { %v267_v1 = vpop.permute.xlu0 %266  ;;  %v815_v4 = vld [vmem:[#allocation3 + $0x10] sm:$0xff] }
 0x14a   : > { %v273_v2 = vsel %vm272_vm11, %v267_v1, %v269_v61 }
 0x14b   : > { %v277_v0 = vsel %vm1649_vm8, %v273_v2, 0.0  ;;  %v816_v3 = vld [vmem:[#allocation3 + $0x18] sm:$0xff] }
 0x14c   : > { %279 = vst [vmem:[#allocation3] sm:$0xf] %v277_v0  ;;  %873 = vmatprep.subr.mxu0 %v816_v3 }
 0x14d   : > { %v292_v6 = vpop.permute.xlu0 %291  ;;  %874 = vmatpush1.msra.mxu0 %v815_v4 }
 0x14e   : > { %v295_v9 = vsel %vm293_vm14, %v290_v63, %v292_v6 }
 0x14f   : > { %299 = vst [vmem:[#allocation3 + $0x8] sm:$0xf0] %v295_v9 }
 0x153   : > { %v813_v13 = vld [vmem:[#allocation3] sm:$0xff] }
 0x156   : > { %v814_v11 = vld [vmem:[#allocation3 + $0x8] sm:$0xff] }
 0x157   : > { %875 = vmatprep.subr.mxu0 %v814_v11 }
 0x158   : > { %876 = vmatpush1.msra.mxu0 %v813_v13 }
 0x159   : > { %910 = vmatmul.mubr.f32.vlgmr.msra.gmra.mxu0 %v812_v12 }
 0x219   : > { %v911_v10 = vpop.f32.mrf.mxu0 }
 0x21a   : > { %916 = vst [vmem:[%s199_s7] sm:$0xff] %v911_v10 }
 0x21b   : > { %v913_v14 = vpop.f32.mrf.mxu0 }
 0x21c   : > { %917 = vst [vmem:[%s199_s7 + $0x8] sm:$0xff] %v913_v14 }
 0x21d   : > { %1189 = shalt.err (!%p1186_p3)
}
 0x21e   : > { %s1190_s21 = scalar_lea.hbm %s931_s25, 256  ;;  %s1194_s24 = scalar_lea.hbm %s1713_s3, 512 }
 0x21f   : > { %p1191_p12 = scmp.ne.s32.totalorder %s931_s25, %s1190_s21  ;;  %p1195_p6 = scmp.lt.s32.totalorder %s931_s25, %s1713_s3 }
 0x220   : > { %p1196_p4 = scmp.lt.s32.totalorder %s1194_s24, %s1190_s21 }
 0x221   : > { %p1192_p5 = pnand %p1191_p12, %p1754_p11 }
 0x222   : > { %p1197_p8 = por %p1196_p4, %p1195_p6 }
 0x223   : > { %p1193_p7 = pneg %p1192_p5 }
 0x225   : > { %p1198_p9 = pnand %p1197_p8, %p1193_p7 }
 0x227   : > { %1201 = shalt.err (!%p1198_p9)
}
 0x228   : > { %1037 = dma.vmem_to_hbm [thread:$0]  (%p1754_p11), %s1670_s6, 256, %s931_s25, %s919_s26  }
 0x229 PF: > { %s945_s29 = sand.u32 1, %s1232_s12   ;;  %p1755_p13 = scmp.ne.s32.totalorder %s1719_s19, 0 }
 0x22a   : > { %p1756_p10 = scmp.ge.s32.totalorder %s1244_s15, 2  ;;  %s946_s30 = scalar_lea.sflag [#allocation6], %s945_s29 }
 0x22c   : > { %p1048_p1 = pnand %p1756_p10, %p1755_p13 }
 0x22e   : > { %p1049_p2 = pneg %p1048_p1 }
 0x230   : > { %1227 = dma.done.wait (%p1049_p2), %s946_s30, 256  }
 0x231   : > { %1229 = vsyncadd (%p1049_p2), %s946_s30, 4294967040  ;;  %p17_p0 = scmp.ge.s32.totalorder %s1343_s23, 4   ;;  %s1757_s12 = smov %s1236_s13 }
 0x232   : > { %s1758_s13 = smov %s1240_s14  ;;  %s1759_s14 = smov %s1370_s4 }
 0x233   : > { %s1760_s15 = smov %s1343_s23  ;;  %19 = sbr.rel (!%p17_p0) target bundleno = 6 (0x6), region = 82 }
 0x238   :  { %951 = vsyncpa [#allocation5], 1 }
 0x239   :  { %953 = vsyncpa [#allocation5 + $0x1], 1 }
 0x23a   :  { %954 = vsyncpa [#allocation8], 1 }
 0x23b   :  { %955 = vsyncpa [#allocation6], 1 }
 0x23c   :  { %957 = vsyncpa [#allocation6 + $0x1], 1 }

</bundles_post_ra>
